<compile_context>
chip_gen: v6e
topology: v6e:2x2x1
jax: 0.10.0
libtpu: 0.0.40
codegen_flags: <defaults>
</compile_context>

<pallas_src>
import jax
import jax.numpy as jnp
from jax.experimental import pallas as pl
from jax.experimental.pallas import tpu as pltpu


# ---------------------------------------------------------------------------
# Pallas kernel 1: fused scaled feature transforms for BOTH graphs.
#   o1        = dinv1[:, None] * (x1 @ w1)                 (85, 200)   MXU
#   o2t[n, :] = dinv2 * sum_k w2[k, n] * x2t[k, :]          (2, 5625)   VPU, lane-dense
# ---------------------------------------------------------------------------
def _gcn_transforms_kernel(x1_ref, w1_ref, s1_ref, x2t_ref, w2t_ref, s2_ref,
                           o1_ref, o2t_ref):
    # Graph 1: K=16 -> 200. Single small MXU matmul.
    # (Pass precision=jax.lax.Precision.HIGHEST if bit-exact f32 parity is ever required.)
    xw1 = jnp.dot(x1_ref[...], w1_ref[...], preferred_element_type=jnp.float32)
    o1_ref[...] = s1_ref[...] * xw1

    # Graph 2: K=8 -> 2 with nodes on the lane axis. Unrolled VPU broadcast-FMA using
    # scalar weights from SMEM; loads and stores are full-width 5625-lane rows.
    s2 = s2_ref[...]                                  # (1, N2)
    c2, k2 = w2t_ref.shape                            # (2, 8), static at trace time
    for n in range(c2):
        acc = w2t_ref[n, 0] * x2t_ref[0:1, :]
        for k in range(1, k2):
            acc = acc + w2t_ref[n, k] * x2t_ref[k:k + 1, :]
        o2t_ref[n:n + 1, :] = s2 * acc


def gcn_transforms(x1, w1, dinv1, x2, w2, dinv2):
    n1, f1 = x1.shape
    c1 = w1.shape[1]
    n2, f2 = x2.shape
    c2 = w2.shape[1]

    x1 = x1.astype(jnp.float32)
    w1 = w1.astype(jnp.float32)
    s1 = dinv1.astype(jnp.float32).reshape(n1, 1)
    x2t = x2.astype(jnp.float32).T                    # (f2, n2): nodes on lanes
    w2t = w2.astype(jnp.float32).T                    # (c2, f2): scalar table for SMEM
    s2 = dinv2.astype(jnp.float32).reshape(1, n2)

    # All blocks are full-extent (single grid step); total VMEM footprint < 1 MB.
    return pl.pallas_call(
        _gcn_transforms_kernel,
        out_shape=(jax.ShapeDtypeStruct((n1, c1), jnp.float32),
                   jax.ShapeDtypeStruct((c2, n2), jnp.float32)),
        grid=(1,),
        in_specs=[
            pl.BlockSpec((n1, f1), lambda i: (0, 0)),
            pl.BlockSpec((f1, c1), lambda i: (0, 0)),
            pl.BlockSpec((n1, 1), lambda i: (0, 0)),
            pl.BlockSpec((f2, n2), lambda i: (0, 0)),
            pl.BlockSpec(memory_space=pltpu.MemorySpace.SMEM),   # (2, 8) weights as scalars
            pl.BlockSpec((1, n2), lambda i: (0, 0)),
        ],
        out_specs=(pl.BlockSpec((n1, c1), lambda i: (0, 0)),
                   pl.BlockSpec((c2, n2), lambda i: (0, 0))),
    )(x1, w1, s1, x2t, w2t, s2)


# ---------------------------------------------------------------------------
# Pallas kernel 2: fused ReLU + Linear over the (virtually concatenated) features.
#   out = relu(h1) @ wf[:68] + relu(h2) @ wf[68:] + bf      == relu(cat(h1,h2)) @ wf + bf
# ---------------------------------------------------------------------------
def _relu_linear_kernel(h1_ref, h2_ref, w1_ref, w2_ref, b_ref, o_ref):
    a1 = jnp.maximum(h1_ref[...], 0.0)
    a2 = jnp.maximum(h2_ref[...], 0.0)
    o = jnp.dot(a1, w1_ref[...], preferred_element_type=jnp.float32)
    o = o + jnp.dot(a2, w2_ref[...], preferred_element_type=jnp.float32)
    # NOTE: output lane width (5) < 128 -> masked stores; negligible at 250x5.
    o_ref[...] = o + b_ref[...]


def relu_linear(h1, h2, wf1, wf2, bf):
    m, k1 = h1.shape
    k2 = h2.shape[1]
    n = wf1.shape[1]
    return pl.pallas_call(
        _relu_linear_kernel,
        out_shape=jax.ShapeDtypeStruct((m, n), jnp.float32),
        grid=(1,),
        in_specs=[
            pl.BlockSpec((m, k1), lambda i: (0, 0)),
            pl.BlockSpec((m, k2), lambda i: (0, 0)),
            pl.BlockSpec((k1, n), lambda i: (0, 0)),
            pl.BlockSpec((k2, n), lambda i: (0, 0)),
            pl.BlockSpec((1, n), lambda i: (0, 0)),
        ],
        out_specs=pl.BlockSpec((m, n), lambda i: (0, 0)),
    )(h1.astype(jnp.float32), h2.astype(jnp.float32),
      wf1.astype(jnp.float32), wf2.astype(jnp.float32),
      bf.reshape(1, n).astype(jnp.float32))


# ---------------------------------------------------------------------------
# GCN normalization (hoisted): D^-1/2 of (A + I).  edge_index is static per graph,
# so this is computed once outside the per-forward path.
# Matches PyG gcn_norm for undirected/symmetrized edge lists (degree from dst).
# ---------------------------------------------------------------------------
def precompute_gcn_norm(edge_index, num_nodes):
    deg = jnp.ones((num_nodes,), jnp.float32).at[edge_index[1]].add(1.0)
    return jax.lax.rsqrt(deg)


# ---------------------------------------------------------------------------
# Spatial_Net3 forward (jit this).
# ---------------------------------------------------------------------------
def spatial_net3_forward(x1, edge_index1, dinv1, x2, edge_index2, dinv2, params):
    # Pallas: fused feature transform + source-side normalization for both graphs.
    sxw1, sxw2t = gcn_transforms(x1, params["w1"], dinv1, x2, params["w2"], dinv2)

    # TODO(synk): the data-dependent scatter-add over arbitrary edge_index has no clean
    # Pallas equivalent; it stays in XLA (fused under jit) and touches only O(E*C) data.
    src1, dst1 = edge_index1[0], edge_index1[1]
    agg1 = jnp.zeros_like(sxw1).at[dst1].add(sxw1[src1])
    h1 = dinv1[:, None] * (agg1 + sxw1) + params["b1"][None, :]       # (85, 200)
    h1 = h1.reshape(250, 68)

    sxw2 = sxw2t.T                                                    # (5625, 2) node-major
    src2, dst2 = edge_index2[0], edge_index2[1]
    agg2 = jnp.zeros_like(sxw2).at[dst2].add(sxw2[src2])
    h2 = dinv2[:, None] * (agg2 + sxw2) + params["b2"][None, :]       # (5625, 2)
    h2 = h2.reshape(250, 45)

    # relu(cat(h1, h2)) @ wf + bf, with the concat folded into two matmuls.
    return relu_linear(h1, h2, params["wf"][:68], params["wf"][68:], params["bf"])


def _ring_edges(n):
    i = jnp.arange(n, dtype=jnp.int32)
    src = jnp.concatenate([i, i])
    dst = jnp.concatenate([(i + 1) % n, (i - 1) % n])
    return jnp.stack([src, dst], axis=0)   # (2, 2n)


if __name__ == "__main__":
    # Sizes dictated by the module's hard-coded reshapes; feature dims kept small.
    N1, F1 = 85, 16       # graph 1: num_node_features1 = 16  -> gcn1 out (85, 200)
    N2, F2 = 5625, 8      # graph 2: num_node_features2 = 8   -> gcn2 out (5625, 2)

    key = jax.random.PRNGKey(0)
    kx1, kx2, kw1, kb1, kw2, kb2, kwf, kbf = jax.random.split(key, 8)

    x1 = jax.random.normal(kx1, (N1, F1), jnp.float32)
    x2 = jax.random.normal(kx2, (N2, F2), jnp.float32)
    edge_index1 = _ring_edges(N1)    # (2, 170)
    edge_index2 = _ring_edges(N2)    # (2, 11250)

    params = {
        "w1": 0.1 * jax.random.normal(kw1, (F1, 200), jnp.float32),
        "b1": 0.1 * jax.random.normal(kb1, (200,), jnp.float32),
        "w2": 0.1 * jax.random.normal(kw2, (F2, 2), jnp.float32),
        "b2": 0.1 * jax.random.normal(kb2, (2,), jnp.float32),
        "wf": 0.1 * jax.random.normal(kwf, (113, 5), jnp.float32),
        "bf": 0.1 * jax.random.normal(kbf, (5,), jnp.float32),
    }

    # Hoisted normalization (edge_index is static per graph).
    dinv1 = precompute_gcn_norm(edge_index1, N1)
    dinv2 = precompute_gcn_norm(edge_index2, N2)

    fwd = jax.jit(spatial_net3_forward)
    out = fwd(x1, edge_index1, dinv1, x2, edge_index2, dinv2, params)
    out = jax.block_until_ready(out)
    assert out.shape == (250, 5) and out.dtype == jnp.float32
    print("KERNEL_OK")
</pallas_src>

<mosaic_0001>
module attributes {stable_mosaic.version = 11 : i64} {
  func.func @_gcn_transforms_kernel(%arg0: i32, %arg1: memref<85x16xf32, #tpu.memory_space<vmem>>, %arg2: memref<16x200xf32, #tpu.memory_space<vmem>>, %arg3: memref<85x1xf32, #tpu.memory_space<vmem>>, %arg4: memref<8x5625xf32, #tpu.memory_space<vmem>>, %arg5: memref<2x8xf32, #tpu.memory_space<smem>>, %arg6: memref<1x5625xf32, #tpu.memory_space<vmem>>, %arg7: memref<85x200xf32, #tpu.memory_space<vmem>>, %arg8: memref<2x5625xf32, #tpu.memory_space<vmem>>) attributes {dimension_semantics = [#tpu.dimension_semantics<arbitrary>], iteration_bounds = array<i64: 1>, scalar_prefetch = 0 : i64, scratch_operands = 0 : i64, tpu.core_type = #tpu.core_type<tc>, window_params = [{pipeline_mode = #tpu.pipeline_mode<synchronous>, transform_indices = @transform_0, window_bounds = array<i64: 85, 16>}, {pipeline_mode = #tpu.pipeline_mode<synchronous>, transform_indices = @transform_1, window_bounds = array<i64: 16, 200>}, {pipeline_mode = #tpu.pipeline_mode<synchronous>, transform_indices = @transform_2, window_bounds = array<i64: 85, 1>}, {pipeline_mode = #tpu.pipeline_mode<synchronous>, transform_indices = @transform_3, window_bounds = array<i64: 8, 5625>}, {transform_indices = @transform_4, window_bounds = array<i64: 2, 8>}, {pipeline_mode = #tpu.pipeline_mode<synchronous>, transform_indices = @transform_5, window_bounds = array<i64: 1, 5625>}, {pipeline_mode = #tpu.pipeline_mode<synchronous>, transform_indices = @transform_6, window_bounds = array<i64: 85, 200>}, {pipeline_mode = #tpu.pipeline_mode<synchronous>, transform_indices = @transform_7, window_bounds = array<i64: 2, 5625>}]} {
    %c0 = arith.constant 0 : index
    %c0_0 = arith.constant 0 : index
    %0 = vector.load %arg1[%c0, %c0_0] : memref<85x16xf32, #tpu.memory_space<vmem>>, vector<85x16xf32>
    %c0_1 = arith.constant 0 : index
    %c0_2 = arith.constant 0 : index
    %1 = vector.load %arg2[%c0_1, %c0_2] : memref<16x200xf32, #tpu.memory_space<vmem>>, vector<16x200xf32>
    %cst = arith.constant dense<0.000000e+00> : vector<85x200xf32>
    %2 = tpu.matmul %0, %1, %cst {dimension_numbers = #tpu.dot_dimension_numbers<[1], [0], [0], [1], [0, 0, 1, 1], [], []>} : vector<85x16xf32>, vector<16x200xf32>, vector<85x200xf32> -> vector<85x200xf32>
    %c0_3 = arith.constant 0 : index
    %c0_4 = arith.constant 0 : index
    %3 = vector.load %arg3[%c0_3, %c0_4] : memref<85x1xf32, #tpu.memory_space<vmem>>, vector<85x1xf32>
    %4 = vector.broadcast %3 : vector<85x1xf32> to vector<85x200xf32>
    %5 = arith.mulf %4, %2 : vector<85x200xf32>
    %c0_5 = arith.constant 0 : index
    %c0_6 = arith.constant 0 : index
    %6 = vector.load %arg7[%c0_5, %c0_6] : memref<85x200xf32, #tpu.memory_space<vmem>>, vector<85x200xf32>
    tpu.vector_store %arg7[%c0_5, %c0_6], %5 {strides = array<i32>} : memref<85x200xf32, #tpu.memory_space<vmem>>, vector<85x200xf32>,
    %c0_7 = arith.constant 0 : index
    %c0_8 = arith.constant 0 : index
    %7 = vector.load %arg6[%c0_7, %c0_8] : memref<1x5625xf32, #tpu.memory_space<vmem>>, vector<1x5625xf32>
    %c0_9 = arith.constant 0 : index
    %c0_10 = arith.constant 0 : index
    %8 = memref.load %arg5[%c0_9, %c0_10] : memref<2x8xf32, #tpu.memory_space<smem>>
    %c0_11 = arith.constant 0 : index
    %c0_12 = arith.constant 0 : index
    %9 = vector.load %arg4[%c0_11, %c0_12] : memref<8x5625xf32, #tpu.memory_space<vmem>>, vector<1x5625xf32>
    %10 = vector.broadcast %8 : f32 to vector<1x5625xf32>
    %11 = arith.mulf %10, %9 : vector<1x5625xf32>
    %c0_13 = arith.constant 0 : index
    %c1 = arith.constant 1 : index
    %12 = memref.load %arg5[%c0_13, %c1] : memref<2x8xf32, #tpu.memory_space<smem>>
    %c1_14 = arith.constant 1 : index
    %c0_15 = arith.constant 0 : index
    %13 = vector.load %arg4[%c1_14, %c0_15] : memref<8x5625xf32, #tpu.memory_space<vmem>>, vector<1x5625xf32>
    %14 = vector.broadcast %12 : f32 to vector<1x5625xf32>
    %15 = arith.mulf %14, %13 : vector<1x5625xf32>
    %16 = arith.addf %11, %15 : vector<1x5625xf32>
    %c0_16 = arith.constant 0 : index
    %c2 = arith.constant 2 : index
    %17 = memref.load %arg5[%c0_16, %c2] : memref<2x8xf32, #tpu.memory_space<smem>>
    %c2_17 = arith.constant 2 : index
    %c0_18 = arith.constant 0 : index
    %18 = vector.load %arg4[%c2_17, %c0_18] : memref<8x5625xf32, #tpu.memory_space<vmem>>, vector<1x5625xf32>
    %19 = vector.broadcast %17 : f32 to vector<1x5625xf32>
    %20 = arith.mulf %19, %18 : vector<1x5625xf32>
    %21 = arith.addf %16, %20 : vector<1x5625xf32>
    %c0_19 = arith.constant 0 : index
    %c3 = arith.constant 3 : index
    %22 = memref.load %arg5[%c0_19, %c3] : memref<2x8xf32, #tpu.memory_space<smem>>
    %c3_20 = arith.constant 3 : index
    %c0_21 = arith.constant 0 : index
    %23 = vector.load %arg4[%c3_20, %c0_21] : memref<8x5625xf32, #tpu.memory_space<vmem>>, vector<1x5625xf32>
    %24 = vector.broadcast %22 : f32 to vector<1x5625xf32>
    %25 = arith.mulf %24, %23 : vector<1x5625xf32>
    %26 = arith.addf %21, %25 : vector<1x5625xf32>
    %c0_22 = arith.constant 0 : index
    %c4 = arith.constant 4 : index
    %27 = memref.load %arg5[%c0_22, %c4] : memref<2x8xf32, #tpu.memory_space<smem>>
    %c4_23 = arith.constant 4 : index
    %c0_24 = arith.constant 0 : index
    %28 = vector.load %arg4[%c4_23, %c0_24] : memref<8x5625xf32, #tpu.memory_space<vmem>>, vector<1x5625xf32>
    %29 = vector.broadcast %27 : f32 to vector<1x5625xf32>
    %30 = arith.mulf %29, %28 : vector<1x5625xf32>
    %31 = arith.addf %26, %30 : vector<1x5625xf32>
    %c0_25 = arith.constant 0 : index
    %c5 = arith.constant 5 : index
    %32 = memref.load %arg5[%c0_25, %c5] : memref<2x8xf32, #tpu.memory_space<smem>>
    %c5_26 = arith.constant 5 : index
    %c0_27 = arith.constant 0 : index
    %33 = vector.load %arg4[%c5_26, %c0_27] : memref<8x5625xf32, #tpu.memory_space<vmem>>, vector<1x5625xf32>
    %34 = vector.broadcast %32 : f32 to vector<1x5625xf32>
    %35 = arith.mulf %34, %33 : vector<1x5625xf32>
    %36 = arith.addf %31, %35 : vector<1x5625xf32>
    %c0_28 = arith.constant 0 : index
    %c6 = arith.constant 6 : index
    %37 = memref.load %arg5[%c0_28, %c6] : memref<2x8xf32, #tpu.memory_space<smem>>
    %c6_29 = arith.constant 6 : index
    %c0_30 = arith.constant 0 : index
    %38 = vector.load %arg4[%c6_29, %c0_30] : memref<8x5625xf32, #tpu.memory_space<vmem>>, vector<1x5625xf32>
    %39 = vector.broadcast %37 : f32 to vector<1x5625xf32>
    %40 = arith.mulf %39, %38 : vector<1x5625xf32>
    %41 = arith.addf %36, %40 : vector<1x5625xf32>
    %c0_31 = arith.constant 0 : index
    %c7 = arith.constant 7 : index
    %42 = memref.load %arg5[%c0_31, %c7] : memref<2x8xf32, #tpu.memory_space<smem>>
    %c7_32 = arith.constant 7 : index
    %c0_33 = arith.constant 0 : index
    %43 = vector.load %arg4[%c7_32, %c0_33] : memref<8x5625xf32, #tpu.memory_space<vmem>>, vector<1x5625xf32>
    %44 = vector.broadcast %42 : f32 to vector<1x5625xf32>
    %45 = arith.mulf %44, %43 : vector<1x5625xf32>
    %46 = arith.addf %41, %45 : vector<1x5625xf32>
    %47 = arith.mulf %7, %46 : vector<1x5625xf32>
    %c0_34 = arith.constant 0 : index
    %c0_35 = arith.constant 0 : index
    %48 = vector.load %arg8[%c0_34, %c0_35] : memref<2x5625xf32, #tpu.memory_space<vmem>>, vector<1x5625xf32>
    tpu.vector_store %arg8[%c0_34, %c0_35], %47 {strides = array<i32>} : memref<2x5625xf32, #tpu.memory_space<vmem>>, vector<1x5625xf32>,
    %c1_36 = arith.constant 1 : index
    %c0_37 = arith.constant 0 : index
    %49 = memref.load %arg5[%c1_36, %c0_37] : memref<2x8xf32, #tpu.memory_space<smem>>
    %c0_38 = arith.constant 0 : index
    %c0_39 = arith.constant 0 : index
    %50 = vector.load %arg4[%c0_38, %c0_39] : memref<8x5625xf32, #tpu.memory_space<vmem>>, vector<1x5625xf32>
    %51 = vector.broadcast %49 : f32 to vector<1x5625xf32>
    %52 = arith.mulf %51, %50 : vector<1x5625xf32>
    %c1_40 = arith.constant 1 : index
    %c1_41 = arith.constant 1 : index
    %53 = memref.load %arg5[%c1_40, %c1_41] : memref<2x8xf32, #tpu.memory_space<smem>>
    %c1_42 = arith.constant 1 : index
    %c0_43 = arith.constant 0 : index
    %54 = vector.load %arg4[%c1_42, %c0_43] : memref<8x5625xf32, #tpu.memory_space<vmem>>, vector<1x5625xf32>
    %55 = vector.broadcast %53 : f32 to vector<1x5625xf32>
    %56 = arith.mulf %55, %54 : vector<1x5625xf32>
    %57 = arith.addf %52, %56 : vector<1x5625xf32>
    %c1_44 = arith.constant 1 : index
    %c2_45 = arith.constant 2 : index
    %58 = memref.load %arg5[%c1_44, %c2_45] : memref<2x8xf32, #tpu.memory_space<smem>>
    %c2_46 = arith.constant 2 : index
    %c0_47 = arith.constant 0 : index
    %59 = vector.load %arg4[%c2_46, %c0_47] : memref<8x5625xf32, #tpu.memory_space<vmem>>, vector<1x5625xf32>
    %60 = vector.broadcast %58 : f32 to vector<1x5625xf32>
    %61 = arith.mulf %60, %59 : vector<1x5625xf32>
    %62 = arith.addf %57, %61 : vector<1x5625xf32>
    %c1_48 = arith.constant 1 : index
    %c3_49 = arith.constant 3 : index
    %63 = memref.load %arg5[%c1_48, %c3_49] : memref<2x8xf32, #tpu.memory_space<smem>>
    %c3_50 = arith.constant 3 : index
    %c0_51 = arith.constant 0 : index
    %64 = vector.load %arg4[%c3_50, %c0_51] : memref<8x5625xf32, #tpu.memory_space<vmem>>, vector<1x5625xf32>
    %65 = vector.broadcast %63 : f32 to vector<1x5625xf32>
    %66 = arith.mulf %65, %64 : vector<1x5625xf32>
    %67 = arith.addf %62, %66 : vector<1x5625xf32>
    %c1_52 = arith.constant 1 : index
    %c4_53 = arith.constant 4 : index
    %68 = memref.load %arg5[%c1_52, %c4_53] : memref<2x8xf32, #tpu.memory_space<smem>>
    %c4_54 = arith.constant 4 : index
    %c0_55 = arith.constant 0 : index
    %69 = vector.load %arg4[%c4_54, %c0_55] : memref<8x5625xf32, #tpu.memory_space<vmem>>, vector<1x5625xf32>
    %70 = vector.broadcast %68 : f32 to vector<1x5625xf32>
    %71 = arith.mulf %70, %69 : vector<1x5625xf32>
    %72 = arith.addf %67, %71 : vector<1x5625xf32>
    %c1_56 = arith.constant 1 : index
    %c5_57 = arith.constant 5 : index
    %73 = memref.load %arg5[%c1_56, %c5_57] : memref<2x8xf32, #tpu.memory_space<smem>>
    %c5_58 = arith.constant 5 : index
    %c0_59 = arith.constant 0 : index
    %74 = vector.load %arg4[%c5_58, %c0_59] : memref<8x5625xf32, #tpu.memory_space<vmem>>, vector<1x5625xf32>
    %75 = vector.broadcast %73 : f32 to vector<1x5625xf32>
    %76 = arith.mulf %75, %74 : vector<1x5625xf32>
    %77 = arith.addf %72, %76 : vector<1x5625xf32>
    %c1_60 = arith.constant 1 : index
    %c6_61 = arith.constant 6 : index
    %78 = memref.load %arg5[%c1_60, %c6_61] : memref<2x8xf32, #tpu.memory_space<smem>>
    %c6_62 = arith.constant 6 : index
    %c0_63 = arith.constant 0 : index
    %79 = vector.load %arg4[%c6_62, %c0_63] : memref<8x5625xf32, #tpu.memory_space<vmem>>, vector<1x5625xf32>
    %80 = vector.broadcast %78 : f32 to vector<1x5625xf32>
    %81 = arith.mulf %80, %79 : vector<1x5625xf32>
    %82 = arith.addf %77, %81 : vector<1x5625xf32>
    %c1_64 = arith.constant 1 : index
    %c7_65 = arith.constant 7 : index
    %83 = memref.load %arg5[%c1_64, %c7_65] : memref<2x8xf32, #tpu.memory_space<smem>>
    %c7_66 = arith.constant 7 : index
    %c0_67 = arith.constant 0 : index
    %84 = vector.load %arg4[%c7_66, %c0_67] : memref<8x5625xf32, #tpu.memory_space<vmem>>, vector<1x5625xf32>
    %85 = vector.broadcast %83 : f32 to vector<1x5625xf32>
    %86 = arith.mulf %85, %84 : vector<1x5625xf32>
    %87 = arith.addf %82, %86 : vector<1x5625xf32>
    %88 = arith.mulf %7, %87 : vector<1x5625xf32>
    %c1_68 = arith.constant 1 : index
    %c0_69 = arith.constant 0 : index
    %89 = vector.load %arg8[%c1_68, %c0_69] : memref<2x5625xf32, #tpu.memory_space<vmem>>, vector<1x5625xf32>
    tpu.vector_store %arg8[%c1_68, %c0_69], %88 {strides = array<i32>} : memref<2x5625xf32, #tpu.memory_space<vmem>>, vector<1x5625xf32>,
    return
  }
  func.func @transform_0(%arg0: i32) -> (i32, i32) {
    %c0_i32 = arith.constant 0 : i32
    %c0_i32_0 = arith.constant 0 : i32
    %c0_i32_1 = arith.constant 0 : i32
    return %c0_i32, %c0_i32_0 : i32, i32
  }
  func.func @transform_1(%arg0: i32) -> (i32, i32) {
    %c0_i32 = arith.constant 0 : i32
    %c0_i32_0 = arith.constant 0 : i32
    %c0_i32_1 = arith.constant 0 : i32
    return %c0_i32, %c0_i32_0 : i32, i32
  }
  func.func @transform_2(%arg0: i32) -> (i32, i32) {
    %c0_i32 = arith.constant 0 : i32
    %c0_i32_0 = arith.constant 0 : i32
    %c0_i32_1 = arith.constant 0 : i32
    return %c0_i32, %c0_i32_0 : i32, i32
  }
  func.func @transform_3(%arg0: i32) -> (i32, i32) {
    %c0_i32 = arith.constant 0 : i32
    %c0_i32_0 = arith.constant 0 : i32
    %c0_i32_1 = arith.constant 0 : i32
    return %c0_i32, %c0_i32_0 : i32, i32
  }
  func.func @transform_4(%arg0: i32) -> (i32, i32) {
    %c0_i32 = arith.constant 0 : i32
    %c0_i32_0 = arith.constant 0 : i32
    %c0_i32_1 = arith.constant 0 : i32
    return %c0_i32, %c0_i32_0 : i32, i32
  }
  func.func @transform_5(%arg0: i32) -> (i32, i32) {
    %c0_i32 = arith.constant 0 : i32
    %c0_i32_0 = arith.constant 0 : i32
    %c0_i32_1 = arith.constant 0 : i32
    return %c0_i32, %c0_i32_0 : i32, i32
  }
  func.func @transform_6(%arg0: i32) -> (i32, i32) {
    %c0_i32 = arith.constant 0 : i32
    %c0_i32_0 = arith.constant 0 : i32
    %c0_i32_1 = arith.constant 0 : i32
    return %c0_i32, %c0_i32_0 : i32, i32
  }
  func.func @transform_7(%arg0: i32) -> (i32, i32) {
    %c0_i32 = arith.constant 0 : i32
    %c0_i32_0 = arith.constant 0 : i32
    %c0_i32_1 = arith.constant 0 : i32
    return %c0_i32, %c0_i32_0 : i32, i32
  }
}

module attributes {stable_mosaic.version = 11 : i64} {
  func.func @_relu_linear_kernel(%arg0: i32, %arg1: memref<250x68xf32, #tpu.memory_space<vmem>>, %arg2: memref<250x45xf32, #tpu.memory_space<vmem>>, %arg3: memref<68x5xf32, #tpu.memory_space<vmem>>, %arg4: memref<45x5xf32, #tpu.memory_space<vmem>>, %arg5: memref<1x5xf32, #tpu.memory_space<vmem>>, %arg6: memref<250x5xf32, #tpu.memory_space<vmem>>) attributes {dimension_semantics = [#tpu.dimension_semantics<arbitrary>], iteration_bounds = array<i64: 1>, scalar_prefetch = 0 : i64, scratch_operands = 0 : i64, tpu.core_type = #tpu.core_type<tc>, window_params = [{pipeline_mode = #tpu.pipeline_mode<synchronous>, transform_indices = @transform_0, window_bounds = array<i64: 250, 68>}, {pipeline_mode = #tpu.pipeline_mode<synchronous>, transform_indices = @transform_1, window_bounds = array<i64: 250, 45>}, {pipeline_mode = #tpu.pipeline_mode<synchronous>, transform_indices = @transform_2, window_bounds = array<i64: 68, 5>}, {pipeline_mode = #tpu.pipeline_mode<synchronous>, transform_indices = @transform_3, window_bounds = array<i64: 45, 5>}, {pipeline_mode = #tpu.pipeline_mode<synchronous>, transform_indices = @transform_4, window_bounds = array<i64: 1, 5>}, {pipeline_mode = #tpu.pipeline_mode<synchronous>, transform_indices = @transform_5, window_bounds = array<i64: 250, 5>}]} {
    %c0 = arith.constant 0 : index
    %c0_0 = arith.constant 0 : index
    %0 = vector.load %arg1[%c0, %c0_0] : memref<250x68xf32, #tpu.memory_space<vmem>>, vector<250x68xf32>
    %cst = arith.constant 0.000000e+00 : f32
    %1 = vector.broadcast %cst : f32 to vector<250x68xf32>
    %2 = arith.maximumf %0, %1 : vector<250x68xf32>
    %c0_1 = arith.constant 0 : index
    %c0_2 = arith.constant 0 : index
    %3 = vector.load %arg2[%c0_1, %c0_2] : memref<250x45xf32, #tpu.memory_space<vmem>>, vector<250x45xf32>
    %cst_3 = arith.constant 0.000000e+00 : f32
    %4 = vector.broadcast %cst_3 : f32 to vector<250x45xf32>
    %5 = arith.maximumf %3, %4 : vector<250x45xf32>
    %c0_4 = arith.constant 0 : index
    %c0_5 = arith.constant 0 : index
    %6 = vector.load %arg3[%c0_4, %c0_5] : memref<68x5xf32, #tpu.memory_space<vmem>>, vector<68x5xf32>
    %cst_6 = arith.constant dense<0.000000e+00> : vector<250x5xf32>
    %7 = tpu.matmul %2, %6, %cst_6 {dimension_numbers = #tpu.dot_dimension_numbers<[1], [0], [0], [1], [0, 0, 1, 1], [], []>} : vector<250x68xf32>, vector<68x5xf32>, vector<250x5xf32> -> vector<250x5xf32>
    %c0_7 = arith.constant 0 : index
    %c0_8 = arith.constant 0 : index
    %8 = vector.load %arg4[%c0_7, %c0_8] : memref<45x5xf32, #tpu.memory_space<vmem>>, vector<45x5xf32>
    %cst_9 = arith.constant dense<0.000000e+00> : vector<250x5xf32>
    %9 = tpu.matmul %5, %8, %cst_9 {dimension_numbers = #tpu.dot_dimension_numbers<[1], [0], [0], [1], [0, 0, 1, 1], [], []>} : vector<250x45xf32>, vector<45x5xf32>, vector<250x5xf32> -> vector<250x5xf32>
    %10 = arith.addf %7, %9 : vector<250x5xf32>
    %c0_10 = arith.constant 0 : index
    %c0_11 = arith.constant 0 : index
    %11 = vector.load %arg5[%c0_10, %c0_11] : memref<1x5xf32, #tpu.memory_space<vmem>>, vector<1x5xf32>
    %12 = vector.broadcast %11 : vector<1x5xf32> to vector<250x5xf32>
    %13 = arith.addf %10, %12 : vector<250x5xf32>
    %c0_12 = arith.constant 0 : index
    %c0_13 = arith.constant 0 : index
    %14 = vector.load %arg6[%c0_12, %c0_13] : memref<250x5xf32, #tpu.memory_space<vmem>>, vector<250x5xf32>
    tpu.vector_store %arg6[%c0_12, %c0_13], %13 {strides = array<i32>} : memref<250x5xf32, #tpu.memory_space<vmem>>, vector<250x5xf32>,
    return
  }
  func.func @transform_0(%arg0: i32) -> (i32, i32) {
    %c0_i32 = arith.constant 0 : i32
    %c0_i32_0 = arith.constant 0 : i32
    %c0_i32_1 = arith.constant 0 : i32
    return %c0_i32, %c0_i32_0 : i32, i32
  }
  func.func @transform_1(%arg0: i32) -> (i32, i32) {
    %c0_i32 = arith.constant 0 : i32
    %c0_i32_0 = arith.constant 0 : i32
    %c0_i32_1 = arith.constant 0 : i32
    return %c0_i32, %c0_i32_0 : i32, i32
  }
  func.func @transform_2(%arg0: i32) -> (i32, i32) {
    %c0_i32 = arith.constant 0 : i32
    %c0_i32_0 = arith.constant 0 : i32
    %c0_i32_1 = arith.constant 0 : i32
    return %c0_i32, %c0_i32_0 : i32, i32
  }
  func.func @transform_3(%arg0: i32) -> (i32, i32) {
    %c0_i32 = arith.constant 0 : i32
    %c0_i32_0 = arith.constant 0 : i32
    %c0_i32_1 = arith.constant 0 : i32
    return %c0_i32, %c0_i32_0 : i32, i32
  }
  func.func @transform_4(%arg0: i32) -> (i32, i32) {
    %c0_i32 = arith.constant 0 : i32
    %c0_i32_0 = arith.constant 0 : i32
    %c0_i32_1 = arith.constant 0 : i32
    return %c0_i32, %c0_i32_0 : i32, i32
  }
  func.func @transform_5(%arg0: i32) -> (i32, i32) {
    %c0_i32 = arith.constant 0 : i32
    %c0_i32_0 = arith.constant 0 : i32
    %c0_i32_1 = arith.constant 0 : i32
    return %c0_i32, %c0_i32_0 : i32, i32
  }
}

</mosaic_0001>

<bundles_post_ra>
// kernel: spatial_net3_forward.2
= control target key start
LH: loop header
LB: loop body
LE: loop exit
PB: predicated region body
PF: predicated region fallthrough
CT: control target
= control target key end

     0   :  { %13 = vsyncpa [#allocation3], 0  ;;  %s1377_s0 = inlined_call_operand.vmem [shape: f32[85,16], index: 0, kind: input, shape index: {}]   ;;  %s1378_s1 = inlined_call_operand.hbm [shape: f32[16,200], index: 1, kind: input, shape index: {}]   ;;  %s1379_s2 = inlined_call_operand.vmem [shape: f32[85,1], index: 2, kind: input, shape index: {}]   ;;  %s1380_s3 = inlined_call_operand.hbm [shape: f32[8,5625], index: 3, kind: input, shape index: {}]   ;;  %s1381_s4 = inlined_call_operand.hbm [shape: f32[2,8], index: 4, kind: input, shape index: {}]   ;;  %s1382_s5 = inlined_call_operand.vmem [shape: f32[1,5625], index: 5, kind: input, shape index: {}]   ;;  %s1383_s6 = inlined_call_operand.vmem [shape: f32[85,200], index: 6, kind: output, shape index: {0}]   ;;  %s1384_s7 = inlined_call_operand.vmem [shape: f32[2,5625], index: 7, kind: output, shape index: {1}]  }
   0x1   :  { %14 = vsyncpa [#allocation6], 0 }
   0x2   :  { %15 = vsyncpa [#allocation4], 0  ;;  %s1029_s24 = smov [#allocation2]  }
   0x3   :  { %s23_s25 = sshll.u32 %s1029_s24, 4  ;;  %s24_s25 = int_to_ptr.vmem [resolvable:$true] %s23_s25 }
   0x4   :  { %s983_s26 = scalar_lea.vmem %s24_s25, 512  ;;  %p988_p1 = scmp.lt.s32.totalorder %s24_s25, %s24_s25 }
   0x5   :  { %p984_p0 = scmp.ne.s32.totalorder %s24_s25, %s983_s26  ;;  %p989_p2 = scmp.lt.s32.totalorder %s983_s26, %s983_s26 }
   0x7   :  { %p990_p3 = por %p989_p2, %p988_p1 }
   0x9   :  { %p991_p4 = pnand %p990_p3, %p984_p0 }
   0xb   :  { %994 = shalt.err (!%p991_p4)
}
   0xc   :  { %s1030_s27 = smov 256   ;;  %s1031_s28 = smov 16  }
   0xd   :  { %29 = dma.hbm_to_vmem [thread:$0]  %s1378_s1, 512, %s24_s25, [#allocation3], %s1030_s27, %s1030_s27, %s1031_s28  }
   0xe   :  { %s1032_s8 = smov [#allocation5]  }
   0xf   :  { %s38_s9 = sshll.u32 %s1032_s8, 4  ;;  %s39_s9 = int_to_ptr.vmem [resolvable:$true] %s38_s9 }
  0x10   :  { %s1003_s10 = scalar_lea.vmem %s39_s9, 5632  ;;  %p1008_p6 = scmp.lt.s32.totalorder %s39_s9, %s39_s9 }
  0x11   :  { %p1004_p5 = scmp.ne.s32.totalorder %s39_s9, %s1003_s10  ;;  %p1009_p7 = scmp.lt.s32.totalorder %s1003_s10, %s1003_s10 }
  0x13   :  { %p1010_p8 = por %p1009_p7, %p1008_p6 }
  0x15   :  { %p1011_p9 = pnand %p1010_p8, %p1004_p5 }
  0x17   :  { %1014 = shalt.err (!%p1011_p9)
}
  0x18   :  { %41 = dma.hbm_to_vmem [thread:$0]  %s1380_s3, 5632, %s39_s9, [#allocation6]  }
  0x19   :  { %s1033_s13 = smov [#allocation7]  }
  0x1a   :  { %49 = dma.hbm_to_smem %s1381_s4, 32, %s1033_s13, [#allocation4]  }
  0x1b   :  { %1023 = dma.done.wait [#allocation3], 512  }
  0x1c   :  { %1024 = vsyncadd [#allocation3], 4294966784 }
  0x1d   :  { %1025 = dma.done.wait [#allocation6], 5632  }
  0x1e   :  { %1026 = vsyncadd [#allocation6], 4294961664 }
  0x1f   :  { %1027 = dma.done.wait [#allocation4], 32  }
  0x20   :  { %1028 = vsyncadd [#allocation4], 4294967264 }
  0x21   :  { %61 = sfence }
  0x22   :  { %v76_v0 = vld [vmem:[#allocation2 + $0x18] sm:$0xff]  ;;  %v75_v1 = vld [vmem:[#allocation2 + $0x10] sm:$0xff]  ;;  %v74_v2 = vld [vmem:[#allocation2 + $0x8] sm:$0xff]  ;;  %vm77_vm0 = vcmask 130048   ;;  %v1034_v6 = vmov 0.0   ;;  %v1035_v11 = vmov 0  }
  0x23   :  { %139 = vmatprep.subr.mxu0 %v76_v0  ;;  %962 = vmatprep.subr.mxu1 %v76_v0  ;;  %v73_v3 = vld [vmem:[#allocation2] sm:$0xff]  ;;  %v68_v5 = vld [vmem:[%s1377_s0 + $0x30] sm:$0xff]  ;;  %v63_v9 = vld [vmem:[%s1377_s0 + $0x8] sm:$0xff]  ;;  %s360_s8 = sld [smem:[#allocation7]]  ;;  %vm331_vm2 = vcmask 588800   ;;  %vm352_vm3 = vcmask 585728  }
  0x24   :  { %140 = vmatpush1.msra.mxu0 %v75_v1  ;;  %964 = vmatpush1.msra.mxu1 %v75_v1  ;;  %v62_v4 = vld [vmem:[%s1377_s0] sm:$0xff]  ;;  %v244_v8 = vld [vmem:[%s1379_s2 + $0x10] sm:$0xff]  ;;  %v69_v10 = vld [vmem:[%s1377_s0 + $0x38] sm:$0xff]  ;;  %s1162_s9 = sld [smem:[#allocation7 + $0x1]] }
  0x25   :  { %141 = vmatprep.subr.mxu0 %v74_v2  ;;  %963 = vmatprep.subr.mxu1 %v74_v2  ;;  %v242_v7 = vld [vmem:[%s1379_s2] sm:$0xff]  ;;  %v243_v12 = vld [vmem:[%s1379_s2 + $0x8] sm:$0xff]  ;;  %v245_v13 = vld [vmem:[%s1379_s2 + $0x18] sm:$0xff]  ;;  %s1164_s10 = sld [smem:[#allocation7 + $0x2]] }
  0x26   :  { %142 = vmatpush1.msra.mxu0 %v73_v3  ;;  %965 = vmatpush1.msra.mxu1 %v73_v3  ;;  %v64_v14 = vld [vmem:[%s1377_s0 + $0x10] sm:$0xff]  ;;  %v70_v15 = vld [vmem:[%s1377_s0 + $0x40] sm:$0xff]  ;;  %v247_v17 = vld [vmem:[%s1379_s2 + $0x28] sm:$0xff]  ;;  %s1173_s11 = sld [smem:[#allocation7 + $0x5]] }
  0x27   :  { %175 = vmatprep.mubr.f32.mxu0 %v1034_v6  ;;  %211 = vmatprep.mubr.f32.mxu1 %v1034_v6  ;;  %v246_v16 = vld [vmem:[%s1379_s2 + $0x20] sm:$0xff]  ;;  %v65_v18 = vld [vmem:[%s1377_s0 + $0x18] sm:$0xff]  ;;  %v71_v19 = vld [vmem:[%s1377_s0 + $0x48] sm:$0xff]  ;;  %s1177_s12 = sld [smem:[#allocation7 + $0x6]] }
  0x28   :  { %925 = vmatmul.mubr.msk.f32.vlgmr.msra.gmra.mxu0 %vm77_vm0, %v62_v4  ;;  %931 = vmatmul.mubr.msk.f32.vlgmr.msra.gmra.mxu1 %vm77_vm0, %v68_v5  ;;  %v248_v20 = vld [vmem:[%s1379_s2 + $0x30] sm:$0xff]  ;;  %v249_v21 = vld [vmem:[%s1379_s2 + $0x38] sm:$0xff]  ;;  %v66_v22 = vld [vmem:[%s1377_s0 + $0x20] sm:$0xff]  ;;  %s1180_s13 = sld [smem:[#allocation7 + $0x7]] }
  0x29   :  { %181 = vmatprep.mubr.f32.mxu0 %v1034_v6  ;;  %217 = vmatprep.mubr.f32.mxu1 %v1034_v6  ;;  %v72_v23 = vld [vmem:[%s1377_s0 + $0x50] sm:$0x1f]  ;;  %v250_v24 = vld [vmem:[%s1379_s2 + $0x40] sm:$0xff]  ;;  %v251_v25 = vld [vmem:[%s1379_s2 + $0x48] sm:$0xff]  ;;  %v382_v50 = vstv %s360_s8  ;;  %s1237_s8 = sld [smem:[#allocation7 + $0x81]] }
  0x2a   :  { %973 = vset.pattern.permute.xlu0 %v1035_v11  ;;  %974 = vset.pattern.permute.xlu1 %v1035_v11  ;;  %v67_v26 = vld [vmem:[%s1377_s0 + $0x28] sm:$0xff]  ;;  %v252_v27 = vld [vmem:[%s1379_s2 + $0x50] sm:$0x1f]  ;;  %v412_v57 = vstv %s1162_s9  ;;  %s1167_s0 = sld [smem:[#allocation7 + $0x3]] }
  0x2b   :  { %255 = vperm.xlu0 %973, %v242_v7   ;;  %265 = vperm.xlu1 %974, %v244_v8   ;;  %v361_v28 = vld [vmem:[#allocation5] ss:$8 sm:$0xf]  ;;  %v391_v32 = vld [vmem:[#allocation5 + $0x1] ss:$8 sm:$0xf] }
  0x2c   :  { %926 = vmatmul.mubr.msk.f32.gmra.mxu0 %vm77_vm0, %v63_v9  ;;  %932 = vmatmul.mubr.msk.f32.gmra.mxu1 %vm77_vm0, %v69_v10  ;;  %v362_v29 = vld [vmem:[#allocation5] ss:$8 sm:$0xf0]  ;;  %v392_v33 = vld [vmem:[#allocation5 + $0x1] ss:$8 sm:$0xf0] }
  0x2d   :  { %187 = vmatprep.mubr.f32.mxu0 %v1034_v6  ;;  %223 = vmatprep.mubr.f32.mxu1 %v1034_v6  ;;  %v365_v30 = vld [vmem:[#allocation5 + $0x40] ss:$8 sm:$0xf]  ;;  %v395_v36 = vld [vmem:[#allocation5 + $0x41] ss:$8 sm:$0xf]  ;;  %v363_v46 = vor.u32 %v362_v29, %v361_v28  ;;  %v393_v51 = vor.u32 %v392_v33, %v391_v32 }
  0x2e   :  { %v366_v31 = vld [vmem:[#allocation5 + $0x40] ss:$8 sm:$0xf0]  ;;  %v396_v37 = vld [vmem:[#allocation5 + $0x41] ss:$8 sm:$0xf0] }
  0x2f   :  { %260 = vperm.xlu0 %973, %v243_v12   ;;  %270 = vperm.xlu1 %974, %v245_v13   ;;  %v369_v34 = vld [vmem:[#allocation5 + $0x80] ss:$8 sm:$0xf]  ;;  %v399_v40 = vld [vmem:[#allocation5 + $0x81] ss:$8 sm:$0xf]  ;;  %v367_v47 = vor.u32 %v366_v31, %v365_v30  ;;  %v397_v52 = vor.u32 %v396_v37, %v395_v36  ;;  %v383_v2 = vmul.f32 %v382_v50, %v363_v46 }
  0x30   :  { %927 = vmatmul.mubr.msk.f32.gmra.mxu0 %vm77_vm0, %v64_v14  ;;  %933 = vmatmul.mubr.msk.f32.gmra.mxu1 %vm77_vm0, %v70_v15  ;;  %v370_v35 = vld [vmem:[#allocation5 + $0x80] ss:$8 sm:$0xf0]  ;;  %v400_v41 = vld [vmem:[#allocation5 + $0x81] ss:$8 sm:$0xf0]  ;;  %v413_v7 = vmul.f32 %v412_v57, %v393_v51  ;;  %v448_v15 = vstv %s1164_s10 }
  0x31   :  { %193 = vmatprep.mubr.f32.mxu0 %v1034_v6  ;;  %229 = vmatprep.mubr.f32.mxu1 %v1034_v6  ;;  %v373_v38 = vld [vmem:[#allocation5 + $0xc0] ss:$8 sm:$0xf]  ;;  %v403_v44 = vld [vmem:[#allocation5 + $0xc1] ss:$8 sm:$0xf]  ;;  %v371_v55 = vor.u32 %v370_v35, %v369_v34  ;;  %v401_v61 = vor.u32 %v400_v41, %v399_v40  ;;  %v384_v3 = vmul.f32 %v382_v50, %v367_v47 }
  0x32   :  { %v374_v39 = vld [vmem:[#allocation5 + $0xc0] ss:$8 sm:$0xf0]  ;;  %v404_v45 = vld [vmem:[#allocation5 + $0xc1] ss:$8 sm:$0xf0]  ;;  %v414_v8 = vmul.f32 %v412_v57, %v397_v52  ;;  %v419_v30 = vadd.f32 %v413_v7, %v383_v2 }
  0x33   :  { %275 = vperm.xlu0 %973, %v246_v16   ;;  %280 = vperm.xlu1 %974, %v247_v17   ;;  %v377_v42 = vld [vmem:[#allocation5 + $0x100] ss:$8 sm:$0xf]  ;;  %v407_v48 = vld [vmem:[#allocation5 + $0x101] ss:$8 sm:$0xf]  ;;  %v375_v60 = vor.u32 %v374_v39, %v373_v38  ;;  %v405_v4 = vor.u32 %v404_v45, %v403_v44  ;;  %v385_v12 = vmul.f32 %v382_v50, %v371_v55  ;;  %v484_v45 = vstv %s1167_s0 }
  0x34   :  { %928 = vmatmul.mubr.msk.f32.gmra.mxu0 %vm77_vm0, %v65_v18  ;;  %934 = vmatmul.mubr.msk.f32.gmra.mxu1 %vm77_vm0, %v71_v19  ;;  %v378_v43 = vld [vmem:[#allocation5 + $0x100] ss:$8 sm:$0xf0]  ;;  %v408_v49 = vld [vmem:[#allocation5 + $0x101] ss:$8 sm:$0xf0]  ;;  %v415_v19 = vmul.f32 %v412_v57, %v401_v61  ;;  %v420_v31 = vadd.f32 %v414_v8, %v384_v3 }
  0x35   :  { %199 = vmatprep.mubr.f32.mxu0 %v1034_v6  ;;  %235 = vmatprep.mubr.f32.mxu1 %v1034_v6  ;;  %v427_v53 = vld [vmem:[#allocation5 + $0x2] ss:$8 sm:$0xf]  ;;  %v381_v56 = vld [vmem:[#allocation5 + $0x140] ss:$8 sm:$0xf]  ;;  %v379_v1 = vor.u32 %v378_v43, %v377_v42  ;;  %v386_v17 = vmul.f32 %v382_v50, %v375_v60 }
  0x36   :  { %v428_v54 = vld [vmem:[#allocation5 + $0x2] ss:$8 sm:$0xf0]  ;;  %v411_v62 = vld [vmem:[#allocation5 + $0x141] ss:$8 sm:$0xf]  ;;  %v388_v18 = vmul.f32 %v382_v50, %v381_v56  ;;  %v421_v41 = vadd.f32 %v415_v19, %v385_v12 }
  0x37   :  { %285 = vperm.xlu0 %973, %v248_v20   ;;  %290 = vperm.xlu1 %974, %v249_v21   ;;  %v431_v58 = vld [vmem:[#allocation5 + $0x42] ss:$8 sm:$0xf]  ;;  %v429_v9 = vor.u32 %v428_v54, %v427_v53  ;;  %v463_v16 = vld [vmem:[#allocation5 + $0x3] ss:$8 sm:$0xf] }
  0x38   :  { %929 = vmatmul.mubr.msk.f32.gmra.mxu0 %vm77_vm0, %v66_v22  ;;  %935 = vmatmul.mubr.msk.f32.gmra.mxu1 %vm77_vm0, %v72_v23  ;;  %v432_v59 = vld [vmem:[#allocation5 + $0x42] ss:$8 sm:$0xf0]  ;;  %v464_v22 = vld [vmem:[#allocation5 + $0x3] ss:$8 sm:$0xf0]  ;;  %v387_v23 = vmul.f32 %v382_v50, %v379_v1 }
  0x39   :  { %205 = vmatprep.mubr.f32.mxu0 %v1034_v6  ;;  %v435_v63 = vld [vmem:[#allocation5 + $0x82] ss:$8 sm:$0xf]  ;;  %v409_v6 = vor.u32 %v408_v49, %v407_v48  ;;  %v433_v13 = vor.u32 %v432_v59, %v431_v58  ;;  %s1170_s2 = sld [smem:[#allocation7 + $0x4]]  ;;  %v449_v32 = vmul.f32 %v448_v15, %v429_v9  ;;  %v465_v37 = vor.u32 %v464_v22, %v463_v16 }
  0x3a   :  { %v436_v0 = vld [vmem:[#allocation5 + $0x82] ss:$8 sm:$0xf0]  ;;  %v468_v28 = vld [vmem:[#allocation5 + $0x43] ss:$8 sm:$0xf0] }
  0x3b   :  { %295 = vperm.xlu0 %973, %v250_v24   ;;  %300 = vperm.xlu1 %974, %v251_v25   ;;  %v439_v5 = vld [vmem:[#allocation5 + $0xc2] ss:$8 sm:$0xf]  ;;  %v437_v20 = vor.u32 %v436_v0, %v435_v63  ;;  %v416_v24 = vmul.f32 %v412_v57, %v405_v4  ;;  %v418_v25 = vmul.f32 %v412_v57, %v411_v62  ;;  %v471_v33 = vld [vmem:[#allocation5 + $0x83] ss:$8 sm:$0xf] }
  0x3c   :  { %930 = vmatmul.mubr.msk.f32.gmra.mxu0 %vm77_vm0, %v67_v26  ;;  %v440_v10 = vld [vmem:[#allocation5 + $0xc2] ss:$8 sm:$0xf0]  ;;  %v417_v29 = vmul.f32 %v412_v57, %v409_v6  ;;  %v472_v34 = vld [vmem:[#allocation5 + $0x83] ss:$8 sm:$0xf0]  ;;  %v450_v36 = vmul.f32 %v448_v15, %v433_v13  ;;  %v455_v53 = vadd.f32 %v449_v32, %v419_v30  ;;  %v485_v60 = vmul.f32 %v484_v45, %v465_v37 }
  0x3d   :  { %v443_v11 = vld [vmem:[#allocation5 + $0x102] ss:$8 sm:$0xf]  ;;  %v441_v26 = vor.u32 %v440_v10, %v439_v5  ;;  %v475_v39 = vld [vmem:[#allocation5 + $0xc3] ss:$8 sm:$0xf]  ;;  %v451_v42 = vmul.f32 %v448_v15, %v437_v20  ;;  %v473_v43 = vor.u32 %v472_v34, %v471_v33  ;;  %v422_v46 = vadd.f32 %v416_v24, %v386_v17 }
  0x3e   :  { %v444_v14 = vld [vmem:[#allocation5 + $0x102] ss:$8 sm:$0xf0]  ;;  %v476_v40 = vld [vmem:[#allocation5 + $0xc3] ss:$8 sm:$0xf0]  ;;  %v424_v47 = vadd.f32 %v418_v25, %v388_v18  ;;  %v423_v52 = vadd.f32 %v417_v29, %v387_v23  ;;  %v456_v59 = vadd.f32 %v450_v36, %v420_v31  ;;  %v491_v19 = vadd.f32 %v485_v60, %v455_v53 }
  0x3f   :  { %305 = vperm.xlu0 %973, %v252_v27   ;;  %v447_v21 = vld [vmem:[#allocation5 + $0x142] ss:$8 sm:$0xf]  ;;  %v467_v27 = vld [vmem:[#allocation5 + $0x43] ss:$8 sm:$0xf]  ;;  %v445_v35 = vor.u32 %v444_v14, %v443_v11  ;;  %v452_v48 = vmul.f32 %v448_v15, %v441_v26  ;;  %v477_v54 = vor.u32 %v476_v40, %v475_v39  ;;  %v457_v0 = vadd.f32 %v451_v42, %v421_v41 }
  0x40   :  { %v469_v38 = vor.u32 %v468_v28, %v467_v27  ;;  %v479_v44 = vld [vmem:[#allocation5 + $0x103] ss:$8 sm:$0xf]  ;;  %v454_v49 = vmul.f32 %v448_v15, %v447_v21  ;;  %v499_v51 = vld [vmem:[#allocation5 + $0x4] ss:$8 sm:$0xf]  ;;  %v487_v2 = vmul.f32 %v484_v45, %v473_v43  ;;  %v520_v16 = vstv %s1170_s2 }
  0x41   :  { %v480_v50 = vld [vmem:[#allocation5 + $0x103] ss:$8 sm:$0xf0]  ;;  %v500_v56 = vld [vmem:[#allocation5 + $0x4] ss:$8 sm:$0xf0]  ;;  %v453_v58 = vmul.f32 %v448_v15, %v445_v35  ;;  %v458_v5 = vadd.f32 %v452_v48, %v422_v46  ;;  %v488_v11 = vmul.f32 %v484_v45, %v477_v54  ;;  %v556_v28 = vstv %s1173_s11 }
  0x42   :  { %v483_v55 = vld [vmem:[#allocation5 + $0x143] ss:$8 sm:$0xf]  ;;  %v503_v57 = vld [vmem:[#allocation5 + $0x44] ss:$8 sm:$0xf]  ;;  %v486_v61 = vmul.f32 %v484_v45, %v469_v38  ;;  %v481_v1 = vor.u32 %v480_v50, %v479_v44  ;;  %v460_v6 = vadd.f32 %v454_v49, %v424_v47  ;;  %v501_v7 = vor.u32 %v500_v56, %v499_v51 }
  0x43   :  { %v504_v62 = vld [vmem:[#allocation5 + $0x44] ss:$8 sm:$0xf0]  ;;  %v459_v17 = vadd.f32 %v453_v58, %v423_v52  ;;  %v490_v18 = vmul.f32 %v484_v45, %v483_v55  ;;  %v535_v21 = vld [vmem:[#allocation5 + $0x5] ss:$8 sm:$0xf]  ;;  %v493_v24 = vadd.f32 %v487_v2, %v457_v0  ;;  %v494_v35 = vadd.f32 %v488_v11, %v458_v5 }
  0x44   :  { %v507_v63 = vld [vmem:[#allocation5 + $0x84] ss:$8 sm:$0xf]  ;;  %v505_v8 = vor.u32 %v504_v62, %v503_v57  ;;  %v492_v20 = vadd.f32 %v486_v61, %v456_v59  ;;  %v536_v22 = vld [vmem:[#allocation5 + $0x5] ss:$8 sm:$0xf0]  ;;  %v489_v23 = vmul.f32 %v484_v45, %v481_v1  ;;  %v521_v29 = vmul.f32 %v520_v16, %v501_v7 }
  0x45   :  { %v508_v3 = vld [vmem:[#allocation5 + $0x84] ss:$8 sm:$0xf0]  ;;  %v539_v26 = vld [vmem:[#allocation5 + $0x45] ss:$8 sm:$0xf]  ;;  %v537_v31 = vor.u32 %v536_v22, %v535_v21  ;;  %v496_v41 = vadd.f32 %v490_v18, %v460_v6  ;;  %v592_v18 = vstv %s1177_s12 }
  0x46   :  { %v511_v4 = vld [vmem:[#allocation5 + $0xc4] ss:$8 sm:$0xf]  ;;  %v509_v12 = vor.u32 %v508_v3, %v507_v63  ;;  %v540_v27 = vld [vmem:[#allocation5 + $0x45] ss:$8 sm:$0xf0]  ;;  %v522_v30 = vmul.f32 %v520_v16, %v505_v8  ;;  %v495_v46 = vadd.f32 %v489_v23, %v459_v17  ;;  %v527_v50 = vadd.f32 %v521_v29, %v491_v19 }
  0x47   :  { %v512_v9 = vld [vmem:[#allocation5 + $0xc4] ss:$8 sm:$0xf0]  ;;  %v541_v32 = vor.u32 %v540_v27, %v539_v26  ;;  %v543_v33 = vld [vmem:[#allocation5 + $0x85] ss:$8 sm:$0xf]  ;;  %v557_v52 = vmul.f32 %v556_v28, %v537_v31 }
  0x48   :  { %v515_v10 = vld [vmem:[#allocation5 + $0x104] ss:$8 sm:$0xf]  ;;  %v513_v13 = vor.u32 %v512_v9, %v511_v4  ;;  %v544_v34 = vld [vmem:[#allocation5 + $0x85] ss:$8 sm:$0xf0]  ;;  %v523_v36 = vmul.f32 %v520_v16, %v509_v12  ;;  %v528_v51 = vadd.f32 %v522_v30, %v492_v20 }
  0x49   :  { %v516_v14 = vld [vmem:[#allocation5 + $0x104] ss:$8 sm:$0xf0]  ;;  %v545_v38 = vor.u32 %v544_v34, %v543_v33  ;;  %v547_v39 = vld [vmem:[#allocation5 + $0xc5] ss:$8 sm:$0xf]  ;;  %v558_v53 = vmul.f32 %v556_v28, %v541_v32  ;;  %v563_v9 = vadd.f32 %v557_v52, %v527_v50  ;;  %v628_v50 = vstv %s1180_s13 }
  0x4a   :  { %v519_v15 = vld [vmem:[#allocation5 + $0x144] ss:$8 sm:$0xf]  ;;  %v517_v25 = vor.u32 %v516_v14, %v515_v10  ;;  %v524_v37 = vmul.f32 %v520_v16, %v513_v13  ;;  %v548_v40 = vld [vmem:[#allocation5 + $0xc5] ss:$8 sm:$0xf0]  ;;  %v529_v56 = vadd.f32 %v523_v36, %v493_v24 }
  0x4b   :  { %v526_v42 = vmul.f32 %v520_v16, %v519_v15  ;;  %v549_v43 = vor.u32 %v548_v40, %v547_v39  ;;  %v551_v44 = vld [vmem:[#allocation5 + $0x105] ss:$8 sm:$0xf]  ;;  %v571_v54 = vld [vmem:[#allocation5 + $0x6] ss:$8 sm:$0xf]  ;;  %v559_v58 = vmul.f32 %v556_v28, %v545_v38  ;;  %v564_v10 = vadd.f32 %v558_v53, %v528_v51 }
  0x4c   :  { %v552_v45 = vld [vmem:[#allocation5 + $0x105] ss:$8 sm:$0xf0]  ;;  %v525_v47 = vmul.f32 %v520_v16, %v517_v25  ;;  %v572_v55 = vld [vmem:[#allocation5 + $0x6] ss:$8 sm:$0xf0]  ;;  %v530_v57 = vadd.f32 %v524_v37, %v494_v35  ;;  %v656_v39 = vlaneseq }
  0x4d   :  { %v553_v48 = vor.u32 %v552_v45, %v551_v44  ;;  %v555_v49 = vld [vmem:[#allocation5 + $0x145] ss:$8 sm:$0xf]  ;;  %v560_v59 = vmul.f32 %v556_v28, %v549_v43  ;;  %v575_v60 = vld [vmem:[#allocation5 + $0x46] ss:$8 sm:$0xf]  ;;  %v532_v62 = vadd.f32 %v526_v42, %v496_v41  ;;  %v573_v63 = vor.u32 %v572_v55, %v571_v54 }
  0x4e   :  { %v576_v61 = vld [vmem:[#allocation5 + $0x46] ss:$8 sm:$0xf0]  ;;  %v531_v3 = vadd.f32 %v525_v47, %v495_v46  ;;  %v562_v5 = vmul.f32 %v556_v28, %v555_v49  ;;  %v565_v14 = vadd.f32 %v559_v58, %v529_v56  ;;  %v607_v23 = vld [vmem:[#allocation5 + $0x7] ss:$8 sm:$0xf] }
  0x4f   :  { %v577_v0 = vor.u32 %v576_v61, %v575_v60  ;;  %v579_v1 = vld [vmem:[#allocation5 + $0x86] ss:$8 sm:$0xf]  ;;  %v561_v4 = vmul.f32 %v556_v28, %v553_v48  ;;  %v566_v15 = vadd.f32 %v560_v59, %v530_v57  ;;  %v593_v19 = vmul.f32 %v592_v18, %v573_v63  ;;  %v608_v24 = vld [vmem:[#allocation5 + $0x7] ss:$8 sm:$0xf0] }
  0x50   :  { %v580_v2 = vld [vmem:[#allocation5 + $0x86] ss:$8 sm:$0xf0]  ;;  %v568_v26 = vadd.f32 %v562_v5, %v532_v62  ;;  %v611_v29 = vld [vmem:[#allocation5 + $0x47] ss:$8 sm:$0xf]  ;;  %v609_v31 = vor.u32 %v608_v24, %v607_v23 }
  0x51   :  { %v581_v6 = vor.u32 %v580_v2, %v579_v1  ;;  %v583_v7 = vld [vmem:[#allocation5 + $0xc6] ss:$8 sm:$0xf]  ;;  %v594_v20 = vmul.f32 %v592_v18, %v577_v0  ;;  %v567_v25 = vadd.f32 %v561_v4, %v531_v3  ;;  %v612_v30 = vld [vmem:[#allocation5 + $0x47] ss:$8 sm:$0xf0]  ;;  %v599_v34 = vadd.f32 %v593_v19, %v563_v9 }
  0x52   :  { %v584_v8 = vld [vmem:[#allocation5 + $0xc6] ss:$8 sm:$0xf0]  ;;  %v615_v32 = vld [vmem:[#allocation5 + $0x87] ss:$8 sm:$0xf]  ;;  %v613_v35 = vor.u32 %v612_v30, %v611_v29  ;;  %v629_v52 = vmul.f32 %v628_v50, %v609_v31 }
  0x53   :  { %v585_v11 = vor.u32 %v584_v8, %v583_v7  ;;  %v587_v12 = vld [vmem:[#allocation5 + $0x106] ss:$8 sm:$0xf]  ;;  %v595_v21 = vmul.f32 %v592_v18, %v581_v6  ;;  %v616_v33 = vld [vmem:[#allocation5 + $0x87] ss:$8 sm:$0xf0]  ;;  %v600_v40 = vadd.f32 %v594_v20, %v564_v10 }
  0x54   :  { %v588_v13 = vld [vmem:[#allocation5 + $0x106] ss:$8 sm:$0xf0]  ;;  %v617_v36 = vor.u32 %v616_v33, %v615_v32  ;;  %v619_v37 = vld [vmem:[#allocation5 + $0xc7] ss:$8 sm:$0xf]  ;;  %v630_v53 = vmul.f32 %v628_v50, %v613_v35  ;;  %v635_v63 = vadd.f32 %v629_v52, %v599_v34 }
  0x55   :  { %v589_v16 = vor.u32 %v588_v13, %v587_v12  ;;  %v591_v17 = vld [vmem:[#allocation5 + $0x146] ss:$8 sm:$0xf]  ;;  %v596_v22 = vmul.f32 %v592_v18, %v585_v11  ;;  %v620_v38 = vld [vmem:[#allocation5 + $0xc7] ss:$8 sm:$0xf0]  ;;  %v601_v41 = vadd.f32 %v595_v21, %v565_v14 }
  0x56   :  { %v598_v28 = vmul.f32 %v592_v18, %v591_v17  ;;  %v621_v43 = vor.u32 %v620_v38, %v619_v37  ;;  %v623_v44 = vld [vmem:[#allocation5 + $0x107] ss:$8 sm:$0xf]  ;;  %v631_v54 = vmul.f32 %v628_v50, %v617_v36  ;;  %v1211_v62 = vld [vmem:[%s1382_s5 + $0x28] sm:$0xf]  ;;  %v636_v0 = vadd.f32 %v630_v53, %v600_v40  ;;  %s1247_s11 = sld [smem:[#allocation7 + $0x82]] }
  0x57   :  { %v597_v27 = vmul.f32 %v592_v18, %v589_v16  ;;  %v602_v42 = vadd.f32 %v596_v22, %v566_v15  ;;  %v624_v45 = vld [vmem:[#allocation5 + $0x107] ss:$8 sm:$0xf0]  ;;  %vm1213_vm1 = vcmp.lt.s32.totalorder %v656_v39, 505  ;;  %s1251_s12 = sld [smem:[#allocation7 + $0x83]] }
  0x58   :  { %v604_v47 = vadd.f32 %v598_v28, %v568_v26  ;;  %v625_v48 = vor.u32 %v624_v45, %v623_v44  ;;  %v627_v49 = vld [vmem:[#allocation5 + $0x147] ss:$8 sm:$0xf]  ;;  %v632_v55 = vmul.f32 %v628_v50, %v621_v43  ;;  %v637_v1 = vadd.f32 %v631_v54, %v601_v41  ;;  %v663_v12 = vld [vmem:[#allocation5] ss:$8 sm:$0xf] }
  0x59   :  { %v603_v46 = vadd.f32 %v597_v27, %v567_v25  ;;  %v1186_v51 = vld [vmem:[%s1382_s5] sm:$0xff]  ;;  %v1191_v56 = vld [vmem:[%s1382_s5 + $0x8] sm:$0xff]  ;;  %v1196_v57 = vld [vmem:[%s1382_s5 + $0x10] sm:$0xff]  ;;  %v634_v60 = vmul.f32 %v628_v50, %v627_v49  ;;  %s1254_s13 = sld [smem:[#allocation7 + $0x84]] }
  0x5a   :  { %v1201_v58 = vld [vmem:[%s1382_s5 + $0x18] sm:$0xff]  ;;  %v633_v59 = vmul.f32 %v628_v50, %v625_v48  ;;  %v1206_v61 = vld [vmem:[%s1382_s5 + $0x20] sm:$0xff]  ;;  %v638_v2 = vadd.f32 %v632_v55, %v602_v42  ;;  %v641_v6 = vmul.f32 %v635_v63, %v1186_v51  ;;  %v642_v7 = vmul.f32 %v636_v0, %v1191_v56  ;;  %s1221_s5 = sld [smem:[#allocation7 + $0x80]] }
  0x5b   :  { %v640_v4 = vadd.f32 %v634_v60, %v604_v47  ;;  %v643_v8 = vmul.f32 %v637_v1, %v1196_v57  ;;  %v664_v13 = vld [vmem:[#allocation5] ss:$8 sm:$0xf0]  ;;  %v687_v20 = vld [vmem:[#allocation5 + $0x1] ss:$8 sm:$0xf] }
  0x5c   :  { %v639_v3 = vadd.f32 %v633_v59, %v603_v46  ;;  %v644_v9 = vmul.f32 %v638_v2, %v1201_v58  ;;  %647 = vst [vmem:[%s1384_s7] ss:$2 sm:$0xff] %v641_v6  ;;  %943 = vst [vmem:[%s1384_s7 + $0x10] ss:$2 sm:$0xff] %v642_v7  ;;  %v666_v14 = vld [vmem:[#allocation5 + $0x40] ss:$8 sm:$0xf]  ;;  %v665_v29 = vor.u32 %v664_v13, %v663_v12  ;;  %v703_v46 = vstv %s1237_s8 }
  0x5d   :  { %v646_v11 = vmul.f32 %v640_v4, %v1211_v62  ;;  %944 = vst [vmem:[%s1384_s7 + $0x20] ss:$2 sm:$0xff] %v643_v8  ;;  %v667_v15 = vld [vmem:[#allocation5 + $0x40] ss:$8 sm:$0xf0]  ;;  %s1258_s14 = sld [smem:[#allocation7 + $0x85]] }
  0x5e   :  { %v645_v10 = vmul.f32 %v639_v3, %v1206_v61  ;;  %945 = vst [vmem:[%s1384_s7 + $0x30] ss:$2 sm:$0xff] %v644_v9  ;;  %v669_v16 = vld [vmem:[#allocation5 + $0x80] ss:$8 sm:$0xf]  ;;  %v668_v31 = vor.u32 %v667_v15, %v666_v14  ;;  %v733_v15 = vstv %s1247_s11  ;;  %s1261_s15 = sld [smem:[#allocation7 + $0x86]] }
  0x5f   :  { %947 = vst.msk [vmem:[%s1384_s7 + $0x50] ss:$2 sm:$0xf] %vm1213_vm1, %v646_v11  ;;  %v670_v17 = vld [vmem:[#allocation5 + $0x80] ss:$8 sm:$0xf0] }
  0x60   :  { %946 = vst [vmem:[%s1384_s7 + $0x40] ss:$2 sm:$0xff] %v645_v10  ;;  %v672_v18 = vld [vmem:[#allocation5 + $0xc0] ss:$8 sm:$0xf]  ;;  %v671_v32 = vor.u32 %v670_v17, %v669_v16  ;;  %v679_v34 = vstv %s1221_s5  ;;  %s1264_s1 = sld [smem:[#allocation7 + $0x87]] }
  0x61   :  { %v673_v19 = vld [vmem:[#allocation5 + $0xc0] ss:$8 sm:$0xf0]  ;;  %v688_v21 = vld [vmem:[#allocation5 + $0x1] ss:$8 sm:$0xf0]  ;;  %v680_v50 = vmul.f32 %v679_v34, %v665_v29  ;;  %v681_v54 = vmul.f32 %v679_v34, %v668_v31 }
  0x62   :  { %v690_v22 = vld [vmem:[#allocation5 + $0x41] ss:$8 sm:$0xf]  ;;  %v675_v26 = vld [vmem:[#allocation5 + $0x100] ss:$8 sm:$0xf]  ;;  %v674_v33 = vor.u32 %v673_v19, %v672_v18  ;;  %v689_v37 = vor.u32 %v688_v21, %v687_v20  ;;  %v682_v55 = vmul.f32 %v679_v34, %v671_v32 }
  0x63   :  { %v691_v23 = vld [vmem:[#allocation5 + $0x41] ss:$8 sm:$0xf0]  ;;  %v676_v30 = vld [vmem:[#allocation5 + $0x100] ss:$8 sm:$0xf0] }
  0x64   :  { %v693_v24 = vld [vmem:[#allocation5 + $0x81] ss:$8 sm:$0xf]  ;;  %v692_v38 = vor.u32 %v691_v23, %v690_v22  ;;  %v717_v41 = vld [vmem:[#allocation5 + $0x2] ss:$8 sm:$0xf]  ;;  %v677_v49 = vor.u32 %v676_v30, %v675_v26  ;;  %v683_v59 = vmul.f32 %v679_v34, %v674_v33  ;;  %v704_v1 = vmul.f32 %v703_v46, %v689_v37 }
  0x65   :  { %v694_v25 = vld [vmem:[#allocation5 + $0x81] ss:$8 sm:$0xf0]  ;;  %v718_v42 = vld [vmem:[#allocation5 + $0x2] ss:$8 sm:$0xf0] }
  0x66   :  { %v696_v27 = vld [vmem:[#allocation5 + $0xc1] ss:$8 sm:$0xf]  ;;  %v695_v39 = vor.u32 %v694_v25, %v693_v24  ;;  %v720_v43 = vld [vmem:[#allocation5 + $0x42] ss:$8 sm:$0xf]  ;;  %v705_v2 = vmul.f32 %v703_v46, %v692_v38  ;;  %v719_v7 = vor.u32 %v718_v42, %v717_v41  ;;  %v684_v18 = vmul.f32 %v679_v34, %v677_v49 }
  0x67   :  { %v697_v28 = vld [vmem:[#allocation5 + $0xc1] ss:$8 sm:$0xf0]  ;;  %v721_v44 = vld [vmem:[#allocation5 + $0x42] ss:$8 sm:$0xf0]  ;;  %v710_v24 = vadd.f32 %v704_v1, %v680_v50 }
  0x68   :  { %v699_v35 = vld [vmem:[#allocation5 + $0x101] ss:$8 sm:$0xf]  ;;  %v698_v40 = vor.u32 %v697_v28, %v696_v27  ;;  %v678_v45 = vld [vmem:[#allocation5 + $0x140] ss:$8 sm:$0xf]  ;;  %v706_v3 = vmul.f32 %v703_v46, %v695_v39  ;;  %v722_v8 = vor.u32 %v721_v44, %v720_v43  ;;  %v711_v25 = vadd.f32 %v705_v2, %v681_v54 }
  0x69   :  { %v700_v36 = vld [vmem:[#allocation5 + $0x101] ss:$8 sm:$0xf0]  ;;  %v723_v47 = vld [vmem:[#allocation5 + $0x82] ss:$8 sm:$0xf]  ;;  %v685_v14 = vmul.f32 %v679_v34, %v678_v45  ;;  %v734_v31 = vmul.f32 %v733_v15, %v719_v7  ;;  %v763_v44 = vstv %s1251_s12 }
  0x6a   :  { %v724_v48 = vld [vmem:[#allocation5 + $0x82] ss:$8 sm:$0xf0]  ;;  %v701_v60 = vor.u32 %v700_v36, %v699_v35  ;;  %v702_v63 = vld [vmem:[#allocation5 + $0x141] ss:$8 sm:$0xf]  ;;  %v707_v4 = vmul.f32 %v703_v46, %v698_v40  ;;  %v712_v26 = vadd.f32 %v706_v3, %v682_v55  ;;  %v735_v32 = vmul.f32 %v733_v15, %v722_v8 }
  0x6b   :  { %v726_v52 = vld [vmem:[#allocation5 + $0xc2] ss:$8 sm:$0xf]  ;;  %v725_v9 = vor.u32 %v724_v48, %v723_v47  ;;  %v747_v11 = vld [vmem:[#allocation5 + $0x3] ss:$8 sm:$0xf]  ;;  %v709_v20 = vmul.f32 %v703_v46, %v702_v63 }
  0x6c   :  { %v727_v53 = vld [vmem:[#allocation5 + $0xc2] ss:$8 sm:$0xf0]  ;;  %v748_v12 = vld [vmem:[#allocation5 + $0x3] ss:$8 sm:$0xf0]  ;;  %v708_v19 = vmul.f32 %v703_v46, %v701_v60  ;;  %v713_v27 = vadd.f32 %v707_v4, %v683_v59  ;;  %v741_v54 = vadd.f32 %v735_v32, %v711_v25 }
  0x6d   :  { %v729_v0 = vld [vmem:[#allocation5 + $0x102] ss:$8 sm:$0xf]  ;;  %v728_v10 = vor.u32 %v727_v53, %v726_v52  ;;  %v750_v13 = vld [vmem:[#allocation5 + $0x43] ss:$8 sm:$0xf]  ;;  %v736_v33 = vmul.f32 %v733_v15, %v725_v9  ;;  %v749_v37 = vor.u32 %v748_v12, %v747_v11  ;;  %v715_v47 = vadd.f32 %v709_v20, %v685_v14 }
  0x6e   :  { %v730_v6 = vld [vmem:[#allocation5 + $0x102] ss:$8 sm:$0xf0]  ;;  %v751_v16 = vld [vmem:[#allocation5 + $0x43] ss:$8 sm:$0xf0]  ;;  %v714_v41 = vadd.f32 %v708_v19, %v684_v18  ;;  %v740_v53 = vadd.f32 %v734_v31, %v710_v24 }
  0x6f   :  { %v753_v17 = vld [vmem:[#allocation5 + $0x83] ss:$8 sm:$0xf]  ;;  %v731_v21 = vor.u32 %v730_v6, %v729_v0  ;;  %v732_v30 = vld [vmem:[#allocation5 + $0x142] ss:$8 sm:$0xf]  ;;  %v737_v35 = vmul.f32 %v733_v15, %v728_v10  ;;  %v752_v34 = vor.u32 %v751_v16, %v750_v13  ;;  %v742_v55 = vadd.f32 %v736_v33, %v712_v26 }
  0x70   :  { %v754_v22 = vld [vmem:[#allocation5 + $0x83] ss:$8 sm:$0xf0]  ;;  %v777_v40 = vld [vmem:[#allocation5 + $0x4] ss:$8 sm:$0xf]  ;;  %v739_v48 = vmul.f32 %v733_v15, %v732_v30  ;;  %v764_v0 = vmul.f32 %v763_v44, %v749_v37 }
  0x71   :  { %v756_v23 = vld [vmem:[#allocation5 + $0xc3] ss:$8 sm:$0xf]  ;;  %v755_v38 = vor.u32 %v754_v22, %v753_v17  ;;  %v738_v42 = vmul.f32 %v733_v15, %v731_v21  ;;  %v778_v45 = vld [vmem:[#allocation5 + $0x4] ss:$8 sm:$0xf0]  ;;  %v743_v59 = vadd.f32 %v737_v35, %v713_v27  ;;  %v765_v1 = vmul.f32 %v763_v44, %v752_v34 }
  0x72   :  { %v757_v28 = vld [vmem:[#allocation5 + $0xc3] ss:$8 sm:$0xf0]  ;;  %v780_v46 = vld [vmem:[#allocation5 + $0x44] ss:$8 sm:$0xf]  ;;  %v779_v9 = vor.u32 %v778_v45, %v777_v40  ;;  %v793_v15 = vstv %s1254_s13  ;;  %v745_v17 = vadd.f32 %v739_v48, %v715_v47  ;;  %v770_v22 = vadd.f32 %v764_v0, %v740_v53 }
  0x73   :  { %v759_v29 = vld [vmem:[#allocation5 + $0x103] ss:$8 sm:$0xf]  ;;  %v758_v39 = vor.u32 %v757_v28, %v756_v23  ;;  %v781_v50 = vld [vmem:[#allocation5 + $0x44] ss:$8 sm:$0xf0]  ;;  %v766_v2 = vmul.f32 %v763_v44, %v755_v38  ;;  %v744_v7 = vadd.f32 %v738_v42, %v714_v41  ;;  %v771_v23 = vadd.f32 %v765_v1, %v741_v54 }
  0x74   :  { %v760_v36 = vld [vmem:[#allocation5 + $0x103] ss:$8 sm:$0xf0]  ;;  %v783_v52 = vld [vmem:[#allocation5 + $0x84] ss:$8 sm:$0xf]  ;;  %v782_v10 = vor.u32 %v781_v50, %v780_v46  ;;  %v823_v47 = vstv %s1258_s14 }
  0x75   :  { %v761_v43 = vor.u32 %v760_v36, %v759_v29  ;;  %v762_v49 = vld [vmem:[#allocation5 + $0x143] ss:$8 sm:$0xf]  ;;  %v784_v60 = vld [vmem:[#allocation5 + $0x84] ss:$8 sm:$0xf0]  ;;  %v767_v3 = vmul.f32 %v763_v44, %v758_v39  ;;  %v772_v24 = vadd.f32 %v766_v2, %v742_v55  ;;  %v794_v29 = vmul.f32 %v793_v15, %v779_v9 }
  0x76   :  { %v786_v63 = vld [vmem:[#allocation5 + $0xc4] ss:$8 sm:$0xf]  ;;  %v785_v12 = vor.u32 %v784_v60, %v783_v52  ;;  %v807_v16 = vld [vmem:[#allocation5 + $0x5] ss:$8 sm:$0xf]  ;;  %v769_v18 = vmul.f32 %v763_v44, %v762_v49  ;;  %v795_v30 = vmul.f32 %v793_v15, %v782_v10 }
  0x77   :  { %v787_v4 = vld [vmem:[#allocation5 + $0xc4] ss:$8 sm:$0xf0]  ;;  %v768_v8 = vmul.f32 %v763_v44, %v761_v43  ;;  %v808_v20 = vld [vmem:[#allocation5 + $0x5] ss:$8 sm:$0xf0]  ;;  %v773_v25 = vadd.f32 %v767_v3, %v743_v59  ;;  %v800_v49 = vadd.f32 %v794_v29, %v770_v22 }
  0x78   :  { %v789_v6 = vld [vmem:[#allocation5 + $0x104] ss:$8 sm:$0xf]  ;;  %v788_v13 = vor.u32 %v787_v4, %v786_v63  ;;  %v810_v21 = vld [vmem:[#allocation5 + $0x45] ss:$8 sm:$0xf]  ;;  %v809_v31 = vor.u32 %v808_v20, %v807_v16  ;;  %v796_v35 = vmul.f32 %v793_v15, %v785_v12  ;;  %v775_v40 = vadd.f32 %v769_v18, %v745_v17 }
  0x79   :  { %v790_v11 = vld [vmem:[#allocation5 + $0x104] ss:$8 sm:$0xf0]  ;;  %v811_v26 = vld [vmem:[#allocation5 + $0x45] ss:$8 sm:$0xf0]  ;;  %v774_v28 = vadd.f32 %v768_v8, %v744_v7  ;;  %v801_v50 = vadd.f32 %v795_v30, %v771_v23  ;;  %v853_v23 = vstv %s1261_s15 }
  0x7a   :  { %v792_v14 = vld [vmem:[#allocation5 + $0x144] ss:$8 sm:$0xf]  ;;  %v791_v19 = vor.u32 %v790_v11, %v789_v6  ;;  %v813_v27 = vld [vmem:[#allocation5 + $0x85] ss:$8 sm:$0xf]  ;;  %v797_v36 = vmul.f32 %v793_v15, %v788_v13  ;;  %v812_v37 = vor.u32 %v811_v26, %v810_v21  ;;  %v824_v52 = vmul.f32 %v823_v47, %v809_v31 }
  0x7b   :  { %v814_v32 = vld [vmem:[#allocation5 + $0x85] ss:$8 sm:$0xf0]  ;;  %v799_v42 = vmul.f32 %v793_v15, %v792_v14  ;;  %v837_v48 = vld [vmem:[#allocation5 + $0x6] ss:$8 sm:$0xf]  ;;  %v802_v59 = vadd.f32 %v796_v35, %v772_v24 }
  0x7c   :  { %v816_v33 = vld [vmem:[#allocation5 + $0xc5] ss:$8 sm:$0xf]  ;;  %v815_v34 = vor.u32 %v814_v32, %v813_v27  ;;  %v798_v41 = vmul.f32 %v793_v15, %v791_v19  ;;  %v825_v53 = vmul.f32 %v823_v47, %v812_v37  ;;  %v838_v54 = vld [vmem:[#allocation5 + $0x6] ss:$8 sm:$0xf0]  ;;  %v803_v60 = vadd.f32 %v797_v36, %v773_v25 }
  0x7d   :  { %v817_v38 = vld [vmem:[#allocation5 + $0xc5] ss:$8 sm:$0xf0]  ;;  %v840_v55 = vld [vmem:[#allocation5 + $0x46] ss:$8 sm:$0xf]  ;;  %v805_v4 = vadd.f32 %v799_v42, %v775_v40  ;;  %v839_v6 = vor.u32 %v838_v54, %v837_v48  ;;  %v830_v15 = vadd.f32 %v824_v52, %v800_v49 }
  0x7e   :  { %v819_v39 = vld [vmem:[#allocation5 + $0x105] ss:$8 sm:$0xf]  ;;  %v818_v43 = vor.u32 %v817_v38, %v816_v33  ;;  %v826_v63 = vmul.f32 %v823_v47, %v815_v34  ;;  %v841_v1 = vld [vmem:[#allocation5 + $0x46] ss:$8 sm:$0xf0]  ;;  %v804_v3 = vadd.f32 %v798_v41, %v774_v28  ;;  %v831_v16 = vadd.f32 %v825_v53, %v801_v50 }
  0x7f   :  { %v820_v44 = vld [vmem:[#allocation5 + $0x105] ss:$8 sm:$0xf0]  ;;  %v843_v2 = vld [vmem:[#allocation5 + $0x86] ss:$8 sm:$0xf]  ;;  %v842_v11 = vor.u32 %v841_v1, %v840_v55  ;;  %v854_v25 = vmul.f32 %v853_v23, %v839_v6  ;;  %v883_v55 = vstv %s1264_s1 }
  0x80   :  { %v822_v45 = vld [vmem:[#allocation5 + $0x145] ss:$8 sm:$0xf]  ;;  %v821_v46 = vor.u32 %v820_v44, %v819_v39  ;;  %v827_v0 = vmul.f32 %v823_v47, %v818_v43  ;;  %v844_v7 = vld [vmem:[#allocation5 + $0x86] ss:$8 sm:$0xf0]  ;;  %v832_v20 = vadd.f32 %v826_v63, %v802_v59 }
  0x81   :  { %v846_v8 = vld [vmem:[#allocation5 + $0xc6] ss:$8 sm:$0xf]  ;;  %v829_v10 = vmul.f32 %v823_v47, %v822_v45  ;;  %v845_v12 = vor.u32 %v844_v7, %v843_v2  ;;  %v867_v24 = vld [vmem:[#allocation5 + $0x7] ss:$8 sm:$0xf]  ;;  %v855_v26 = vmul.f32 %v853_v23, %v842_v11  ;;  %v860_v40 = vadd.f32 %v854_v25, %v830_v15 }
  0x82   :  { %v828_v9 = vmul.f32 %v823_v47, %v821_v46  ;;  %v847_v13 = vld [vmem:[#allocation5 + $0xc6] ss:$8 sm:$0xf0]  ;;  %v833_v21 = vadd.f32 %v827_v0, %v803_v60  ;;  %v868_v29 = vld [vmem:[#allocation5 + $0x7] ss:$8 sm:$0xf0] }
  0x83   :  { %v849_v14 = vld [vmem:[#allocation5 + $0x106] ss:$8 sm:$0xf]  ;;  %v848_v17 = vor.u32 %v847_v13, %v846_v8  ;;  %v856_v27 = vmul.f32 %v853_v23, %v845_v12  ;;  %v870_v30 = vld [vmem:[#allocation5 + $0x47] ss:$8 sm:$0xf]  ;;  %v835_v32 = vadd.f32 %v829_v10, %v805_v4  ;;  %v869_v34 = vor.u32 %v868_v29, %v867_v24 }
  0x84   :  { %v850_v18 = vld [vmem:[#allocation5 + $0x106] ss:$8 sm:$0xf0]  ;;  %v834_v31 = vadd.f32 %v828_v9, %v804_v3  ;;  %v871_v36 = vld [vmem:[#allocation5 + $0x47] ss:$8 sm:$0xf0]  ;;  %v861_v45 = vadd.f32 %v855_v26, %v831_v16 }
  0x85   :  { %v852_v19 = vld [vmem:[#allocation5 + $0x146] ss:$8 sm:$0xf]  ;;  %v851_v22 = vor.u32 %v850_v18, %v849_v14  ;;  %v857_v28 = vmul.f32 %v853_v23, %v848_v17  ;;  %v873_v37 = vld [vmem:[#allocation5 + $0x87] ss:$8 sm:$0xf]  ;;  %v872_v41 = vor.u32 %v871_v36, %v870_v30  ;;  %v862_v46 = vadd.f32 %v856_v27, %v832_v20 }
  0x86   :  { %v859_v35 = vmul.f32 %v853_v23, %v852_v19  ;;  %v874_v38 = vld [vmem:[#allocation5 + $0x87] ss:$8 sm:$0xf0]  ;;  %v884_v59 = vmul.f32 %v883_v55, %v869_v34 }
  0x87   :  { %v858_v33 = vmul.f32 %v853_v23, %v851_v22  ;;  %v876_v39 = vld [vmem:[#allocation5 + $0xc7] ss:$8 sm:$0xf]  ;;  %v875_v42 = vor.u32 %v874_v38, %v873_v37  ;;  %v863_v47 = vadd.f32 %v857_v28, %v833_v21  ;;  %v885_v60 = vmul.f32 %v883_v55, %v872_v41 }
  0x88   :  { %v877_v43 = vld [vmem:[#allocation5 + $0xc7] ss:$8 sm:$0xf0]  ;;  %v865_v53 = vadd.f32 %v859_v35, %v835_v32  ;;  %v890_v3 = vadd.f32 %v884_v59, %v860_v40 }
  0x89   :  { %v879_v44 = vld [vmem:[#allocation5 + $0x107] ss:$8 sm:$0xf]  ;;  %v878_v48 = vor.u32 %v877_v43, %v876_v39  ;;  %v864_v52 = vadd.f32 %v858_v33, %v834_v31  ;;  %v886_v63 = vmul.f32 %v883_v55, %v875_v42  ;;  %v891_v4 = vadd.f32 %v885_v60, %v861_v45 }
  0x8a   :  { %v880_v49 = vld [vmem:[#allocation5 + $0x107] ss:$8 sm:$0xf0]  ;;  %v896_v10 = vmul.f32 %v890_v3, %v1186_v51 }
  0x8b   :  { %v882_v50 = vld [vmem:[#allocation5 + $0x147] ss:$8 sm:$0xf]  ;;  %v881_v54 = vor.u32 %v880_v49, %v879_v44  ;;  %v887_v0 = vmul.f32 %v883_v55, %v878_v48  ;;  %v892_v6 = vadd.f32 %v886_v63, %v862_v46  ;;  %v897_v11 = vmul.f32 %v891_v4, %v1191_v56 }
  0x8c   :  { %v889_v2 = vmul.f32 %v883_v55, %v882_v50  ;;  %956 = vst [vmem:[%s1384_s7 + $0x1] ss:$2 sm:$0xff] %v896_v10 }
  0x8d   :  { %v888_v1 = vmul.f32 %v883_v55, %v881_v54  ;;  %v893_v7 = vadd.f32 %v887_v0, %v863_v47  ;;  %v898_v12 = vmul.f32 %v892_v6, %v1196_v57  ;;  %957 = vst [vmem:[%s1384_s7 + $0x11] ss:$2 sm:$0xff] %v897_v11 }
  0x8e   :  { %v895_v9 = vadd.f32 %v889_v2, %v865_v53 }
  0x8f   :  { %v894_v8 = vadd.f32 %v888_v1, %v864_v52  ;;  %v899_v13 = vmul.f32 %v893_v7, %v1201_v58  ;;  %958 = vst [vmem:[%s1384_s7 + $0x21] ss:$2 sm:$0xff] %v898_v12 }
  0x90   :  { %v901_v15 = vmul.f32 %v895_v9, %v1211_v62 }
  0x91   :  { %v900_v14 = vmul.f32 %v894_v8, %v1206_v61  ;;  %959 = vst [vmem:[%s1384_s7 + $0x31] ss:$2 sm:$0xff] %v899_v13 }
  0x92   :  { %961 = vst.msk [vmem:[%s1384_s7 + $0x51] ss:$2 sm:$0xf] %vm1213_vm1, %v901_v15 }
  0x93   :  { %960 = vst [vmem:[%s1384_s7 + $0x41] ss:$2 sm:$0xff] %v900_v14 }
  0xa6   :  { %v256_v51 = vpop.permute.xlu0 %255  ;;  %v266_v56 = vpop.permute.xlu1 %265 }
  0xaa   :  { %v261_v57 = vpop.permute.xlu0 %260  ;;  %v271_v58 = vpop.permute.xlu1 %270 }
  0xae   :  { %v1293_v61 = vpop.permute.xlu0 %275  ;;  %v1295_v62 = vpop.permute.xlu1 %280 }
  0xb2   :  { %v286_v16 = vpop.permute.xlu0 %285  ;;  %v291_v22 = vpop.permute.xlu1 %290 }
  0xb6   :  { %v296_v31 = vpop.permute.xlu0 %295  ;;  %v301_v40 = vpop.permute.xlu1 %300 }
  0xba   :  { %v306_v49 = vpop.permute.xlu0 %305 }
  0xe8   :  { %v177_v17 = vpop.f32.mrf.mxu0  ;;  %v213_v18 = vpop.f32.mrf.mxu1 }
  0xe9   :  { %v308_v19 = vmul.f32 %v256_v51, %v177_v17  ;;  %v320_v20 = vmul.f32 %v286_v16, %v213_v18 }
  0xea   :  { %v179_v21 = vpop.f32.mrf.mxu0  ;;  %v215_v5 = vpop.f32.mrf.mxu1 }
  0xeb   :  { %330 = vst [vmem:[%s1383_s6] sm:$0xff] %v308_v19  ;;  %343 = vst [vmem:[%s1383_s6 + $0x60] sm:$0xff] %v320_v20  ;;  %v309_v23 = vmul.f32 %v256_v51, %v179_v21  ;;  %v321_v24 = vmul.f32 %v286_v16, %v215_v5 }
  0xec   :  { %v183_v25 = vpop.f32.mrf.mxu0  ;;  %v219_v26 = vpop.f32.mrf.mxu1 }
  0xed   :  { %332 = vst.msk [vmem:[%s1383_s6 + $0x8] sm:$0xff] %vm331_vm2, %v309_v23  ;;  %344 = vst.msk [vmem:[%s1383_s6 + $0x68] sm:$0xff] %vm331_vm2, %v321_v24  ;;  %v310_v27 = vmul.f32 %v261_v57, %v183_v25  ;;  %v322_v28 = vmul.f32 %v291_v22, %v219_v26 }
  0xee   :  { %v185_v29 = vpop.f32.mrf.mxu0  ;;  %v221_v30 = vpop.f32.mrf.mxu1 }
  0xef   :  { %333 = vst [vmem:[%s1383_s6 + $0x10] sm:$0xff] %v310_v27  ;;  %345 = vst [vmem:[%s1383_s6 + $0x70] sm:$0xff] %v322_v28  ;;  %v311_v32 = vmul.f32 %v261_v57, %v185_v29  ;;  %v323_v33 = vmul.f32 %v291_v22, %v221_v30 }
  0xf0   :  { %v189_v35 = vpop.f32.mrf.mxu0  ;;  %v225_v36 = vpop.f32.mrf.mxu1 }
  0xf1   :  { %334 = vst.msk [vmem:[%s1383_s6 + $0x18] sm:$0xff] %vm331_vm2, %v311_v32  ;;  %346 = vst.msk [vmem:[%s1383_s6 + $0x78] sm:$0xff] %vm331_vm2, %v323_v33  ;;  %v312_v37 = vmul.f32 %v266_v56, %v189_v35  ;;  %v324_v34 = vmul.f32 %v296_v31, %v225_v36 }
  0xf2   :  { %v191_v38 = vpop.f32.mrf.mxu0  ;;  %v227_v39 = vpop.f32.mrf.mxu1 }
  0xf3   :  { %335 = vst [vmem:[%s1383_s6 + $0x20] sm:$0xff] %v312_v37  ;;  %347 = vst [vmem:[%s1383_s6 + $0x80] sm:$0xff] %v324_v34  ;;  %v313_v41 = vmul.f32 %v266_v56, %v191_v38  ;;  %v325_v42 = vmul.f32 %v296_v31, %v227_v39 }
  0xf4   :  { %v195_v43 = vpop.f32.mrf.mxu0  ;;  %v231_v44 = vpop.f32.mrf.mxu1 }
  0xf5   :  { %336 = vst.msk [vmem:[%s1383_s6 + $0x28] sm:$0xff] %vm331_vm2, %v313_v41  ;;  %348 = vst.msk [vmem:[%s1383_s6 + $0x88] sm:$0xff] %vm331_vm2, %v325_v42  ;;  %v314_v45 = vmul.f32 %v271_v58, %v195_v43  ;;  %v326_v46 = vmul.f32 %v301_v40, %v231_v44 }
  0xf6   :  { %v197_v47 = vpop.f32.mrf.mxu0  ;;  %v233_v48 = vpop.f32.mrf.mxu1 }
  0xf7   :  { %337 = vst [vmem:[%s1383_s6 + $0x30] sm:$0xff] %v314_v45  ;;  %349 = vst [vmem:[%s1383_s6 + $0x90] sm:$0xff] %v326_v46  ;;  %v315_v50 = vmul.f32 %v271_v58, %v197_v47  ;;  %v327_v52 = vmul.f32 %v301_v40, %v233_v48 }
  0xf8   :  { %v201_v53 = vpop.f32.mrf.mxu0  ;;  %v237_v54 = vpop.f32.mrf.mxu1 }
  0xf9   :  { %338 = vst.msk [vmem:[%s1383_s6 + $0x38] sm:$0xff] %vm331_vm2, %v315_v50  ;;  %350 = vst.msk [vmem:[%s1383_s6 + $0x98] sm:$0xff] %vm331_vm2, %v327_v52  ;;  %v316_v55 = vmul.f32 %v1293_v61, %v201_v53  ;;  %v328_v59 = vmul.f32 %v306_v49, %v237_v54 }
  0xfa   :  { %v203_v60 = vpop.f32.mrf.mxu0  ;;  %v239_v63 = vpop.f32.mrf.mxu1 }
  0xfb   :  { %339 = vst [vmem:[%s1383_s6 + $0x40] sm:$0xff] %v316_v55  ;;  %351 = vst [vmem:[%s1383_s6 + $0xa0] sm:$0x1f] %v328_v59  ;;  %v317_v0 = vmul.f32 %v1293_v61, %v203_v60  ;;  %v329_v1 = vmul.f32 %v306_v49, %v239_v63 }
  0xfc   :  { %v207_v2 = vpop.f32.mrf.mxu0 }
  0xfd   :  { %340 = vst.msk [vmem:[%s1383_s6 + $0x48] sm:$0xff] %vm331_vm2, %v317_v0  ;;  %v318_v3 = vmul.f32 %v1295_v62, %v207_v2 }
  0xfe   :  { %353 = vst.msk [vmem:[%s1383_s6 + $0xa8] sm:$0x1f] %vm352_vm3, %v329_v1  ;;  %v209_v4 = vpop.f32.mrf.mxu0 }
  0xff   :  { %341 = vst [vmem:[%s1383_s6 + $0x50] sm:$0xff] %v318_v3  ;;  %v319_v6 = vmul.f32 %v1295_v62, %v209_v4 }
 0x101   :  { %342 = vst.msk [vmem:[%s1383_s6 + $0x58] sm:$0xff] %vm331_vm2, %v319_v6 }
 0x102   :  { %922 = vsyncpa [#allocation3], 1 }
 0x103   :  { %923 = vsyncpa [#allocation6], 1 }
 0x104   :  { %924 = vsyncpa [#allocation4], 1 }

// kernel: spatial_net3_forward.3
= control target key start
LH: loop header
LB: loop body
LE: loop exit
PB: predicated region body
PF: predicated region fallthrough
CT: control target
= control target key end

     0   :  { %vm586_vm0 = vcmask 1043456   ;;  %vm260_vm1 = vcmask 1044480   ;;  %vm163_vm2 = vcmask 367616   ;;  %vm489_vm3 = vcmask 556032   ;;  %s1659_s2 = inlined_call_operand.vmem [shape: f32[68,5], index: 2, kind: input, shape index: {}]   ;;  %s1660_s3 = inlined_call_operand.vmem [shape: f32[45,5], index: 3, kind: input, shape index: {}]   ;;  %s1661_s1 = inlined_call_operand.vmem [shape: f32[250,45], index: 1, kind: input, shape index: {}]   ;;  %s1662_s0 = inlined_call_operand.vmem [shape: f32[250,68], index: 0, kind: input, shape index: {}]   ;;  %s1663_s4 = inlined_call_operand.vmem [shape: f32[1,5], index: 4, kind: input, shape index: {}]   ;;  %s1664_s5 = inlined_call_operand.vmem [shape: f32[250,5], index: 5, kind: output, shape index: {}]  }
   0x1   :  { %v156_v0 = vld [vmem:[%s1659_s2 + $0x40] sm:$0xf]  ;;  %v155_v1 = vld [vmem:[%s1659_s2 + $0x38] sm:$0xff]  ;;  %v162_v2 = vld [vmem:[%s1660_s3 + $0x28] sm:$0x1f]  ;;  %vm854_vm4 = vcmask 39936  }
   0x2   :  { %1098 = vmatprep.subr.msk.mxu1 %vm586_vm0, %v156_v0  ;;  %1038 = vmatprep.subr.msk.mxu0 %vm260_vm1, %v162_v2  ;;  %v161_v3 = vld [vmem:[%s1660_s3 + $0x20] sm:$0xff]  ;;  %v154_v4 = vld [vmem:[%s1659_s2 + $0x30] sm:$0xff]  ;;  %v160_v5 = vld [vmem:[%s1660_s3 + $0x18] sm:$0xff]  ;;  %vm886_vm5 = vcmask 33792  }
   0x3   :  { %1099 = vmatpush3.msk.msra.mxu1 %vm586_vm0, %v156_v0  ;;  %1039 = vmatpush3.msk.msra.mxu0 %vm260_vm1, %v162_v2  ;;  %v153_v6 = vld [vmem:[%s1659_s2 + $0x28] sm:$0xff]  ;;  %v159_v7 = vld [vmem:[%s1660_s3 + $0x10] sm:$0xff]  ;;  %v152_v8 = vld [vmem:[%s1659_s2 + $0x20] sm:$0xff] }
   0x4   :  { %1100 = vmatprep.subr.mxu1 %v155_v1  ;;  %1040 = vmatprep.subr.mxu0 %v161_v3  ;;  %v158_v9 = vld [vmem:[%s1660_s3 + $0x8] sm:$0xff]  ;;  %v84_v10 = vld [vmem:[%s1661_s1] sm:$0xff]  ;;  %v151_v12 = vld [vmem:[%s1659_s2 + $0x18] sm:$0xff] }
   0x5   :  { %1101 = vmatpush3.msra.mxu1 %v155_v1  ;;  %1041 = vmatpush3.msra.mxu0 %v161_v3  ;;  %v85_v11 = vld [vmem:[%s1661_s1 + $0x8] sm:$0xff]  ;;  %v157_v13 = vld [vmem:[%s1660_s3] sm:$0xff]  ;;  %v116_v15 = vmax.f32 %v84_v10, 0.0  ;;  %v86_v16 = vld [vmem:[%s1661_s1 + $0x10] sm:$0xff] }
   0x6   :  { %1102 = vmatprep.subr.mxu1 %v154_v4  ;;  %1042 = vmatprep.subr.mxu0 %v160_v5  ;;  %v20_v14 = vld [vmem:[%s1662_s0] sm:$0xff]  ;;  %v150_v17 = vld [vmem:[%s1659_s2 + $0x10] sm:$0xff]  ;;  %v117_v18 = vmax.f32 %v85_v11, 0.0  ;;  %v87_v20 = vld [vmem:[%s1661_s1 + $0x18] sm:$0xff]  ;;  %v118_v23 = vmax.f32 %v86_v16, 0.0 }
   0x7   :  { %1103 = vmatpush3.msra.mxu1 %v154_v4  ;;  %1043 = vmatpush3.msra.mxu0 %v160_v5  ;;  %v52_v19 = vmax.f32 %v20_v14, 0.0  ;;  %v149_v21 = vld [vmem:[%s1659_s2 + $0x8] sm:$0xff]  ;;  %v88_v24 = vld [vmem:[%s1661_s1 + $0x20] sm:$0xff]  ;;  %v22_v25 = vld [vmem:[%s1662_s0 + $0x10] sm:$0xff]  ;;  %v119_v27 = vmax.f32 %v87_v20, 0.0 }
   0x8   :  { %1104 = vmatprep.subr.mxu1 %v153_v6  ;;  %1044 = vmatprep.subr.mxu0 %v159_v7  ;;  %v21_v22 = vld [vmem:[%s1662_s0 + $0x8] sm:$0xff]  ;;  %v148_v26 = vld [vmem:[%s1659_s2] sm:$0xff]  ;;  %v120_v29 = vmax.f32 %v88_v24, 0.0  ;;  %v54_v31 = vmax.f32 %v22_v25, 0.0  ;;  %v23_v32 = vld [vmem:[%s1662_s0 + $0x18] sm:$0xff] }
   0x9   :  { %1105 = vmatpush3.msra.mxu1 %v153_v6  ;;  %1045 = vmatpush3.msra.mxu0 %v159_v7  ;;  %v53_v28 = vmax.f32 %v21_v22, 0.0  ;;  %v89_v30 = vld [vmem:[%s1661_s1 + $0x28] sm:$0xff]  ;;  %v90_v33 = vld [vmem:[%s1661_s1 + $0x30] sm:$0xff]  ;;  %v24_v34 = vld [vmem:[%s1662_s0 + $0x20] sm:$0xff]  ;;  %v55_v36 = vmax.f32 %v23_v32, 0.0 }
   0xa   :  { %1106 = vmatprep.subr.mxu1 %v152_v8  ;;  %1046 = vmatprep.subr.mxu0 %v158_v9  ;;  %v121_v35 = vmax.f32 %v89_v30, 0.0  ;;  %v122_v37 = vmax.f32 %v90_v33, 0.0  ;;  %v91_v38 = vld [vmem:[%s1661_s1 + $0x38] sm:$0xff]  ;;  %v56_v39 = vmax.f32 %v24_v34, 0.0  ;;  %v25_v40 = vld [vmem:[%s1662_s0 + $0x28] sm:$0xff]  ;;  %v92_v41 = vld [vmem:[%s1661_s1 + $0x40] sm:$0xff] }
   0xb   :  { %1107 = vmatpush3.msra.mxu1 %v152_v8  ;;  %1047 = vmatpush3.msra.mxu0 %v158_v9  ;;  %v26_v42 = vld [vmem:[%s1662_s0 + $0x30] sm:$0xff]  ;;  %v123_v43 = vmax.f32 %v91_v38, 0.0  ;;  %v57_v44 = vmax.f32 %v25_v40, 0.0  ;;  %v124_v45 = vmax.f32 %v92_v41, 0.0  ;;  %v93_v46 = vld [vmem:[%s1661_s1 + $0x48] sm:$0xff]  ;;  %v27_v48 = vld [vmem:[%s1662_s0 + $0x38] sm:$0xff] }
   0xc   :  { %1108 = vmatprep.subr.mxu1 %v151_v12  ;;  %1048 = vmatprep.subr.mxu0 %v157_v13  ;;  %v58_v47 = vmax.f32 %v26_v42, 0.0  ;;  %v94_v49 = vld [vmem:[%s1661_s1 + $0x50] sm:$0xff]  ;;  %v28_v50 = vld [vmem:[%s1662_s0 + $0x40] sm:$0xff]  ;;  %v125_v51 = vmax.f32 %v93_v46, 0.0  ;;  %v59_v52 = vmax.f32 %v27_v48, 0.0  ;;  %v95_v54 = vld [vmem:[%s1661_s1 + $0x58] sm:$0xff] }
   0xd   :  { %1109 = vmatpush3.msra.mxu1 %v151_v12  ;;  %1049 = vmatpush3.msra.mxu0 %v157_v13  ;;  %v126_v53 = vmax.f32 %v94_v49, 0.0  ;;  %v60_v55 = vmax.f32 %v28_v50, 0.0  ;;  %v29_v56 = vld [vmem:[%s1662_s0 + $0x48] sm:$0xff]  ;;  %v96_v57 = vld [vmem:[%s1661_s1 + $0x60] sm:$0xff]  ;;  %v30_v58 = vld [vmem:[%s1662_s0 + $0x50] sm:$0xff]  ;;  %v127_v59 = vmax.f32 %v95_v54, 0.0 }
   0xe   :  { %1110 = vmatprep.subr.mxu1 %v150_v17  ;;  %1050 = vmatprep.mubr.msk.f32.mxu0 %vm163_vm2, %v116_v15  ;;  %v61_v60 = vmax.f32 %v29_v56, 0.0  ;;  %v128_v61 = vmax.f32 %v96_v57, 0.0  ;;  %v97_v62 = vld [vmem:[%s1661_s1 + $0x68] sm:$0xff]  ;;  %v62_v63 = vmax.f32 %v30_v58, 0.0  ;;  %v31_v0 = vld [vmem:[%s1662_s0 + $0x58] sm:$0xff]  ;;  %v98_v1 = vld [vmem:[%s1661_s1 + $0x70] sm:$0xff] }
   0xf   :  { %1111 = vmatpush3.msra.mxu1 %v150_v17  ;;  %1051 = vmatmul.mubr.msk.f32.vlgmr.msra.gmra.mxu0 %vm163_vm2, %v117_v18  ;;  %v32_v2 = vld [vmem:[%s1662_s0 + $0x60] sm:$0xff]  ;;  %v129_v3 = vmax.f32 %v97_v62, 0.0  ;;  %v63_v4 = vmax.f32 %v31_v0, 0.0  ;;  %v130_v5 = vmax.f32 %v98_v1, 0.0  ;;  %v99_v6 = vld [vmem:[%s1661_s1 + $0x78] sm:$0xff]  ;;  %v33_v8 = vld [vmem:[%s1662_s0 + $0x68] sm:$0xff] }
  0x10   :  { %1112 = vmatprep.subr.mxu1 %v149_v21  ;;  %1116 = vmatprep.mubr.msk.f32.mxu1 %vm489_vm3, %v52_v19  ;;  %v64_v7 = vmax.f32 %v32_v2, 0.0  ;;  %v100_v9 = vld [vmem:[%s1661_s1 + $0x80] sm:$0xff]  ;;  %v34_v10 = vld [vmem:[%s1662_s0 + $0x70] sm:$0xff]  ;;  %v131_v11 = vmax.f32 %v99_v6, 0.0  ;;  %v65_v12 = vmax.f32 %v33_v8, 0.0  ;;  %v101_v14 = vld [vmem:[%s1661_s1 + $0x88] sm:$0xff] }
  0x11   :  { %1113 = vmatpush3.msra.mxu1 %v149_v21  ;;  %1053 = vmatprep.mubr.msk.f32.mxu0 %vm163_vm2, %v118_v23  ;;  %v132_v13 = vmax.f32 %v100_v9, 0.0  ;;  %v66_v15 = vmax.f32 %v34_v10, 0.0  ;;  %v35_v16 = vld [vmem:[%s1662_s0 + $0x78] sm:$0xff]  ;;  %v102_v17 = vld [vmem:[%s1661_s1 + $0x90] sm:$0xff]  ;;  %v36_v18 = vld [vmem:[%s1662_s0 + $0x80] sm:$0xff]  ;;  %v133_v19 = vmax.f32 %v101_v14, 0.0 }
  0x12   :  { %1114 = vmatprep.subr.mxu1 %v148_v26  ;;  %v67_v20 = vmax.f32 %v35_v16, 0.0  ;;  %v134_v21 = vmax.f32 %v102_v17, 0.0  ;;  %v103_v22 = vld [vmem:[%s1661_s1 + $0x98] sm:$0xff]  ;;  %v68_v23 = vmax.f32 %v36_v18, 0.0  ;;  %v37_v24 = vld [vmem:[%s1662_s0 + $0x88] sm:$0xff]  ;;  %v104_v25 = vld [vmem:[%s1661_s1 + $0xa0] sm:$0xff] }
  0x13   :  { %1115 = vmatpush3.msra.mxu1 %v148_v26  ;;  %1054 = vmatmul.mubr.msk.f32.gmra.mxu0 %vm163_vm2, %v119_v27  ;;  %v38_v26 = vld [vmem:[%s1662_s0 + $0x90] sm:$0xff]  ;;  %v135_v27 = vmax.f32 %v103_v22, 0.0  ;;  %v105_v30 = vld [vmem:[%s1661_s1 + $0xa8] sm:$0xff]  ;;  %v39_v32 = vld [vmem:[%s1662_s0 + $0x98] sm:$0xff] }
  0x14   :  { %1117 = vmatmul.mubr.msk.f32.vlgmr.msra.gmra.mxu1 %vm489_vm3, %v53_v28  ;;  %1056 = vmatprep.mubr.msk.f32.mxu0 %vm163_vm2, %v120_v29  ;;  %v69_v28 = vmax.f32 %v37_v24, 0.0  ;;  %v136_v29 = vmax.f32 %v104_v25, 0.0  ;;  %v106_v33 = vld [vmem:[%s1661_s1 + $0xb0] sm:$0xff]  ;;  %v40_v34 = vld [vmem:[%s1662_s0 + $0xa0] sm:$0xff]  ;;  %v107_v38 = vld [vmem:[%s1661_s1 + $0xb8] sm:$0xff] }
  0x15   :  { %1119 = vmatprep.mubr.msk.f32.mxu1 %vm489_vm3, %v54_v31  ;;  %v70_v31 = vmax.f32 %v38_v26, 0.0  ;;  %v41_v40 = vld [vmem:[%s1662_s0 + $0xa8] sm:$0xff]  ;;  %v108_v41 = vld [vmem:[%s1661_s1 + $0xc0] sm:$0xff]  ;;  %v42_v42 = vld [vmem:[%s1662_s0 + $0xb0] sm:$0xff] }
  0x16   :  { %v109_v46 = vld [vmem:[%s1661_s1 + $0xc8] sm:$0xff]  ;;  %v43_v48 = vld [vmem:[%s1662_s0 + $0xb8] sm:$0xff]  ;;  %v110_v49 = vld [vmem:[%s1661_s1 + $0xd0] sm:$0xff] }
  0x17   :  { %1057 = vmatmul.mubr.msk.f32.gmra.mxu0 %vm163_vm2, %v121_v35  ;;  %v137_v35 = vmax.f32 %v105_v30, 0.0  ;;  %v44_v50 = vld [vmem:[%s1662_s0 + $0xc0] sm:$0xff]  ;;  %v111_v54 = vld [vmem:[%s1661_s1 + $0xd8] sm:$0xff]  ;;  %v45_v56 = vld [vmem:[%s1662_s0 + $0xc8] sm:$0xff] }
  0x18   :  { %1120 = vmatmul.mubr.msk.f32.gmra.mxu1 %vm489_vm3, %v55_v36  ;;  %1059 = vmatprep.mubr.msk.f32.mxu0 %vm163_vm2, %v122_v37  ;;  %v71_v36 = vmax.f32 %v39_v32, 0.0  ;;  %v138_v37 = vmax.f32 %v106_v33, 0.0  ;;  %v112_v57 = vld [vmem:[%s1661_s1 + $0xe0] sm:$0xff]  ;;  %v46_v58 = vld [vmem:[%s1662_s0 + $0xd0] sm:$0xff]  ;;  %v113_v62 = vld [vmem:[%s1661_s1 + $0xe8] sm:$0xff] }
  0x19   :  { %1122 = vmatprep.mubr.msk.f32.mxu1 %vm489_vm3, %v56_v39  ;;  %v72_v39 = vmax.f32 %v40_v34, 0.0  ;;  %v47_v0 = vld [vmem:[%s1662_s0 + $0xd8] sm:$0xff]  ;;  %v114_v1 = vld [vmem:[%s1661_s1 + $0xf0] sm:$0xff]  ;;  %v48_v2 = vld [vmem:[%s1662_s0 + $0xe0] sm:$0xff] }
  0x1a   :  { %v115_v6 = vld [vmem:[%s1661_s1 + $0xf8] sm:$0x3]  ;;  %v49_v8 = vld [vmem:[%s1662_s0 + $0xe8] sm:$0xff]  ;;  %v50_v9 = vld [vmem:[%s1662_s0 + $0xf0] sm:$0xff] }
  0x1b   :  { %1060 = vmatmul.mubr.msk.f32.gmra.mxu0 %vm163_vm2, %v123_v43  ;;  %v139_v43 = vmax.f32 %v107_v38, 0.0  ;;  %v147_v10 = vmax.f32 %v115_v6, 0.0 }
  0x1c   :  { %1123 = vmatmul.mubr.msk.f32.gmra.mxu1 %vm489_vm3, %v57_v44  ;;  %1062 = vmatprep.mubr.msk.f32.mxu0 %vm163_vm2, %v124_v45  ;;  %v73_v44 = vmax.f32 %v41_v40, 0.0  ;;  %v140_v45 = vmax.f32 %v108_v41, 0.0 }
  0x1d   :  { %1125 = vmatprep.mubr.msk.f32.mxu1 %vm489_vm3, %v58_v47  ;;  %v74_v47 = vmax.f32 %v42_v42, 0.0 }
  0x1f   :  { %1063 = vmatmul.mubr.msk.f32.gmra.mxu0 %vm163_vm2, %v125_v51  ;;  %v141_v51 = vmax.f32 %v109_v46, 0.0 }
  0x20   :  { %1126 = vmatmul.mubr.msk.f32.gmra.mxu1 %vm489_vm3, %v59_v52  ;;  %1065 = vmatprep.mubr.msk.f32.mxu0 %vm163_vm2, %v126_v53  ;;  %v75_v52 = vmax.f32 %v43_v48, 0.0  ;;  %v142_v53 = vmax.f32 %v110_v49, 0.0 }
  0x21   :  { %1128 = vmatprep.mubr.msk.f32.mxu1 %vm489_vm3, %v60_v55  ;;  %v76_v55 = vmax.f32 %v44_v50, 0.0 }
  0x23   :  { %1066 = vmatmul.mubr.msk.f32.gmra.mxu0 %vm163_vm2, %v127_v59  ;;  %v143_v59 = vmax.f32 %v111_v54, 0.0 }
  0x24   :  { %1129 = vmatmul.mubr.msk.f32.gmra.mxu1 %vm489_vm3, %v61_v60  ;;  %1068 = vmatprep.mubr.msk.f32.mxu0 %vm163_vm2, %v128_v61  ;;  %v77_v60 = vmax.f32 %v45_v56, 0.0  ;;  %v144_v61 = vmax.f32 %v112_v57, 0.0 }
  0x25   :  { %1131 = vmatprep.mubr.msk.f32.mxu1 %vm489_vm3, %v62_v63  ;;  %v78_v63 = vmax.f32 %v46_v58, 0.0 }
  0x27   :  { %1069 = vmatmul.mubr.msk.f32.gmra.mxu0 %vm163_vm2, %v129_v3  ;;  %v145_v3 = vmax.f32 %v113_v62, 0.0 }
  0x28   :  { %1132 = vmatmul.mubr.msk.f32.gmra.mxu1 %vm489_vm3, %v63_v4  ;;  %1071 = vmatprep.mubr.msk.f32.mxu0 %vm163_vm2, %v130_v5  ;;  %v79_v4 = vmax.f32 %v47_v0, 0.0  ;;  %v146_v5 = vmax.f32 %v114_v1, 0.0 }
  0x29   :  { %1134 = vmatprep.mubr.msk.f32.mxu1 %vm489_vm3, %v64_v7  ;;  %v80_v7 = vmax.f32 %v48_v2, 0.0 }
  0x2b   :  { %1072 = vmatmul.mubr.msk.f32.gmra.mxu0 %vm163_vm2, %v131_v11  ;;  %v81_v11 = vmax.f32 %v49_v8, 0.0 }
  0x2c   :  { %1135 = vmatmul.mubr.msk.f32.gmra.mxu1 %vm489_vm3, %v65_v12  ;;  %1074 = vmatprep.mubr.msk.f32.mxu0 %vm163_vm2, %v132_v13  ;;  %v82_v12 = vmax.f32 %v50_v9, 0.0  ;;  %v51_v13 = vld [vmem:[%s1662_s0 + $0xf8] sm:$0x3] }
  0x2d   :  { %1137 = vmatprep.mubr.msk.f32.mxu1 %vm489_vm3, %v66_v15  ;;  %v83_v14 = vmax.f32 %v51_v13, 0.0 }
  0x2f   :  { %1075 = vmatmul.mubr.msk.f32.gmra.mxu0 %vm163_vm2, %v133_v19  ;;  %v1498_v19 = vld [vmem:[%s1663_s4] ss:$0 sm:$0xff] }
  0x30   :  { %1138 = vmatmul.mubr.msk.f32.gmra.mxu1 %vm489_vm3, %v67_v20  ;;  %1077 = vmatprep.mubr.msk.f32.mxu0 %vm163_vm2, %v134_v21 }
  0x31   :  { %1140 = vmatprep.mubr.msk.f32.mxu1 %vm489_vm3, %v68_v23 }
  0x33   :  { %1078 = vmatmul.mubr.msk.f32.gmra.mxu0 %vm163_vm2, %v135_v27 }
  0x34   :  { %1141 = vmatmul.mubr.msk.f32.gmra.mxu1 %vm489_vm3, %v69_v28  ;;  %1080 = vmatprep.mubr.msk.f32.mxu0 %vm163_vm2, %v136_v29 }
  0x35   :  { %1143 = vmatprep.mubr.msk.f32.mxu1 %vm489_vm3, %v70_v31 }
  0x37   :  { %1081 = vmatmul.mubr.msk.f32.gmra.mxu0 %vm163_vm2, %v137_v35 }
  0x38   :  { %1144 = vmatmul.mubr.msk.f32.gmra.mxu1 %vm489_vm3, %v71_v36  ;;  %1083 = vmatprep.mubr.msk.f32.mxu0 %vm163_vm2, %v138_v37 }
  0x39   :  { %1146 = vmatprep.mubr.msk.f32.mxu1 %vm489_vm3, %v72_v39 }
  0x3b   :  { %1084 = vmatmul.mubr.msk.f32.gmra.mxu0 %vm163_vm2, %v139_v43 }
  0x3c   :  { %1147 = vmatmul.mubr.msk.f32.gmra.mxu1 %vm489_vm3, %v73_v44  ;;  %1086 = vmatprep.mubr.msk.f32.mxu0 %vm163_vm2, %v140_v45 }
  0x3d   :  { %1149 = vmatprep.mubr.msk.f32.mxu1 %vm489_vm3, %v74_v47 }
  0x3f   :  { %1087 = vmatmul.mubr.msk.f32.gmra.mxu0 %vm163_vm2, %v141_v51 }
  0x40   :  { %1150 = vmatmul.mubr.msk.f32.gmra.mxu1 %vm489_vm3, %v75_v52  ;;  %1089 = vmatprep.mubr.msk.f32.mxu0 %vm163_vm2, %v142_v53 }
  0x41   :  { %1152 = vmatprep.mubr.msk.f32.mxu1 %vm489_vm3, %v76_v55 }
  0x43   :  { %1090 = vmatmul.mubr.msk.f32.gmra.mxu0 %vm163_vm2, %v143_v59 }
  0x44   :  { %1153 = vmatmul.mubr.msk.f32.gmra.mxu1 %vm489_vm3, %v77_v60  ;;  %1092 = vmatprep.mubr.msk.f32.mxu0 %vm163_vm2, %v144_v61 }
  0x45   :  { %1155 = vmatprep.mubr.msk.f32.mxu1 %vm489_vm3, %v78_v63 }
  0x47   :  { %1093 = vmatmul.mubr.msk.f32.gmra.mxu0 %vm163_vm2, %v145_v3 }
  0x48   :  { %1156 = vmatmul.mubr.msk.f32.gmra.mxu1 %vm489_vm3, %v79_v4  ;;  %1095 = vmatprep.mubr.msk.f32.mxu0 %vm163_vm2, %v146_v5 }
  0x49   :  { %1158 = vmatprep.mubr.msk.f32.mxu1 %vm489_vm3, %v80_v7 }
  0x4b   :  { %1096 = vmatmul.mubr.msk.f32.gmra.mxu0 %vm163_vm2, %v147_v10 }
  0x4c   :  { %1159 = vmatmul.mubr.msk.f32.gmra.mxu1 %vm489_vm3, %v81_v11 }
  0x4d   :  { %1161 = vmatprep.mubr.msk.f32.mxu1 %vm489_vm3, %v82_v12 }
  0x50   :  { %1162 = vmatmul.mubr.msk.f32.gmra.mxu1 %vm489_vm3, %v83_v14 }
  0xcf   :  { %v1052_v15 = vpop.f32.mrf.mxu0 }
  0xd1   :  { %v330_v16 = vpop.f32.mrf.mxu0 }
  0xd3   :  { %v1055_v17 = vpop.f32.mrf.mxu0 }
  0xd4   :  { %v1118_v18 = vpop.f32.mrf.mxu1 }
  0xd5   :  { %v662_v20 = vadd.f32 %v1118_v18, %v1052_v15  ;;  %v340_v21 = vpop.f32.mrf.mxu0 }
  0xd6   :  { %v656_v22 = vpop.f32.mrf.mxu1 }
  0xd7   :  { %v823_v23 = vadd.f32 %v1498_v19, %v662_v20  ;;  %v657_v24 = vadd.f32 %v656_v22, %v330_v16  ;;  %v1058_v25 = vpop.f32.mrf.mxu0 }
  0xd8   :  { %v1121_v26 = vpop.f32.mrf.mxu1 }
  0xd9   :  { %856 = vst.msk [vmem:[%s1664_s5 + $0x8] sm:$0xff] %vm854_vm4, %v823_v23  ;;  %v822_v27 = vadd.f32 %v1498_v19, %v657_v24  ;;  %v672_v28 = vadd.f32 %v1121_v26, %v1055_v17  ;;  %v350_v29 = vpop.f32.mrf.mxu0 }
  0xda   :  { %v666_v30 = vpop.f32.mrf.mxu1 }
  0xdb   :  { %855 = vst.msk [vmem:[%s1664_s5] sm:$0xff] %vm854_vm4, %v822_v27  ;;  %v825_v31 = vadd.f32 %v1498_v19, %v672_v28  ;;  %v667_v32 = vadd.f32 %v666_v30, %v340_v21  ;;  %v1061_v33 = vpop.f32.mrf.mxu0 }
  0xdc   :  { %v1124_v34 = vpop.f32.mrf.mxu1 }
  0xdd   :  { %858 = vst.msk [vmem:[%s1664_s5 + $0x18] sm:$0xff] %vm854_vm4, %v825_v31  ;;  %v824_v35 = vadd.f32 %v1498_v19, %v667_v32  ;;  %v682_v36 = vadd.f32 %v1124_v34, %v1058_v25  ;;  %v360_v37 = vpop.f32.mrf.mxu0 }
  0xde   :  { %v676_v38 = vpop.f32.mrf.mxu1 }
  0xdf   :  { %857 = vst.msk [vmem:[%s1664_s5 + $0x10] sm:$0xff] %vm854_vm4, %v824_v35  ;;  %v827_v39 = vadd.f32 %v1498_v19, %v682_v36  ;;  %v677_v40 = vadd.f32 %v676_v38, %v350_v29  ;;  %v1064_v41 = vpop.f32.mrf.mxu0 }
  0xe0   :  { %v1127_v42 = vpop.f32.mrf.mxu1 }
  0xe1   :  { %860 = vst.msk [vmem:[%s1664_s5 + $0x28] sm:$0xff] %vm854_vm4, %v827_v39  ;;  %v826_v43 = vadd.f32 %v1498_v19, %v677_v40  ;;  %v692_v44 = vadd.f32 %v1127_v42, %v1061_v33  ;;  %v370_v45 = vpop.f32.mrf.mxu0 }
  0xe2   :  { %v686_v46 = vpop.f32.mrf.mxu1 }
  0xe3   :  { %859 = vst.msk [vmem:[%s1664_s5 + $0x20] sm:$0xff] %vm854_vm4, %v826_v43  ;;  %v829_v47 = vadd.f32 %v1498_v19, %v692_v44  ;;  %v687_v48 = vadd.f32 %v686_v46, %v360_v37  ;;  %v1067_v49 = vpop.f32.mrf.mxu0 }
  0xe4   :  { %v1130_v50 = vpop.f32.mrf.mxu1 }
  0xe5   :  { %862 = vst.msk [vmem:[%s1664_s5 + $0x38] sm:$0xff] %vm854_vm4, %v829_v47  ;;  %v828_v51 = vadd.f32 %v1498_v19, %v687_v48  ;;  %v702_v52 = vadd.f32 %v1130_v50, %v1064_v41  ;;  %v380_v53 = vpop.f32.mrf.mxu0 }
  0xe6   :  { %v696_v54 = vpop.f32.mrf.mxu1 }
  0xe7   :  { %861 = vst.msk [vmem:[%s1664_s5 + $0x30] sm:$0xff] %vm854_vm4, %v828_v51  ;;  %v831_v55 = vadd.f32 %v1498_v19, %v702_v52  ;;  %v697_v56 = vadd.f32 %v696_v54, %v370_v45  ;;  %v1070_v57 = vpop.f32.mrf.mxu0 }
  0xe8   :  { %v1133_v58 = vpop.f32.mrf.mxu1 }
  0xe9   :  { %864 = vst.msk [vmem:[%s1664_s5 + $0x48] sm:$0xff] %vm854_vm4, %v831_v55  ;;  %v830_v59 = vadd.f32 %v1498_v19, %v697_v56  ;;  %v712_v60 = vadd.f32 %v1133_v58, %v1067_v49  ;;  %v390_v61 = vpop.f32.mrf.mxu0 }
  0xea   :  { %v706_v62 = vpop.f32.mrf.mxu1 }
  0xeb   :  { %863 = vst.msk [vmem:[%s1664_s5 + $0x40] sm:$0xff] %vm854_vm4, %v830_v59  ;;  %v833_v63 = vadd.f32 %v1498_v19, %v712_v60  ;;  %v707_v0 = vadd.f32 %v706_v62, %v380_v53  ;;  %v1073_v1 = vpop.f32.mrf.mxu0 }
  0xec   :  { %v1136_v2 = vpop.f32.mrf.mxu1 }
  0xed   :  { %866 = vst.msk [vmem:[%s1664_s5 + $0x58] sm:$0xff] %vm854_vm4, %v833_v63  ;;  %v832_v3 = vadd.f32 %v1498_v19, %v707_v0  ;;  %v722_v4 = vadd.f32 %v1136_v2, %v1070_v57  ;;  %v400_v5 = vpop.f32.mrf.mxu0 }
  0xee   :  { %v716_v6 = vpop.f32.mrf.mxu1 }
  0xef   :  { %865 = vst.msk [vmem:[%s1664_s5 + $0x50] sm:$0xff] %vm854_vm4, %v832_v3  ;;  %v835_v7 = vadd.f32 %v1498_v19, %v722_v4  ;;  %v717_v8 = vadd.f32 %v716_v6, %v390_v61  ;;  %v1076_v9 = vpop.f32.mrf.mxu0 }
  0xf0   :  { %v1139_v10 = vpop.f32.mrf.mxu1 }
  0xf1   :  { %868 = vst.msk [vmem:[%s1664_s5 + $0x68] sm:$0xff] %vm854_vm4, %v835_v7  ;;  %v834_v11 = vadd.f32 %v1498_v19, %v717_v8  ;;  %v732_v12 = vadd.f32 %v1139_v10, %v1073_v1  ;;  %v410_v13 = vpop.f32.mrf.mxu0 }
  0xf2   :  { %v726_v14 = vpop.f32.mrf.mxu1 }
  0xf3   :  { %867 = vst.msk [vmem:[%s1664_s5 + $0x60] sm:$0xff] %vm854_vm4, %v834_v11  ;;  %v837_v15 = vadd.f32 %v1498_v19, %v732_v12  ;;  %v727_v16 = vadd.f32 %v726_v14, %v400_v5  ;;  %v1079_v17 = vpop.f32.mrf.mxu0 }
  0xf4   :  { %v1142_v18 = vpop.f32.mrf.mxu1 }
  0xf5   :  { %870 = vst.msk [vmem:[%s1664_s5 + $0x78] sm:$0xff] %vm854_vm4, %v837_v15  ;;  %v836_v20 = vadd.f32 %v1498_v19, %v727_v16  ;;  %v742_v21 = vadd.f32 %v1142_v18, %v1076_v9  ;;  %v420_v22 = vpop.f32.mrf.mxu0 }
  0xf6   :  { %v736_v23 = vpop.f32.mrf.mxu1 }
  0xf7   :  { %869 = vst.msk [vmem:[%s1664_s5 + $0x70] sm:$0xff] %vm854_vm4, %v836_v20  ;;  %v839_v24 = vadd.f32 %v1498_v19, %v742_v21  ;;  %v737_v25 = vadd.f32 %v736_v23, %v410_v13  ;;  %v1082_v26 = vpop.f32.mrf.mxu0 }
  0xf8   :  { %v1145_v27 = vpop.f32.mrf.mxu1 }
  0xf9   :  { %872 = vst.msk [vmem:[%s1664_s5 + $0x88] sm:$0xff] %vm854_vm4, %v839_v24  ;;  %v838_v28 = vadd.f32 %v1498_v19, %v737_v25  ;;  %v752_v29 = vadd.f32 %v1145_v27, %v1079_v17  ;;  %v430_v30 = vpop.f32.mrf.mxu0 }
  0xfa   :  { %v746_v31 = vpop.f32.mrf.mxu1 }
  0xfb   :  { %871 = vst.msk [vmem:[%s1664_s5 + $0x80] sm:$0xff] %vm854_vm4, %v838_v28  ;;  %v841_v32 = vadd.f32 %v1498_v19, %v752_v29  ;;  %v747_v33 = vadd.f32 %v746_v31, %v420_v22  ;;  %v1085_v34 = vpop.f32.mrf.mxu0 }
  0xfc   :  { %v1148_v35 = vpop.f32.mrf.mxu1 }
  0xfd   :  { %874 = vst.msk [vmem:[%s1664_s5 + $0x98] sm:$0xff] %vm854_vm4, %v841_v32  ;;  %v840_v36 = vadd.f32 %v1498_v19, %v747_v33  ;;  %v762_v37 = vadd.f32 %v1148_v35, %v1082_v26  ;;  %v440_v38 = vpop.f32.mrf.mxu0 }
  0xfe   :  { %v756_v39 = vpop.f32.mrf.mxu1 }
  0xff   :  { %873 = vst.msk [vmem:[%s1664_s5 + $0x90] sm:$0xff] %vm854_vm4, %v840_v36  ;;  %v843_v40 = vadd.f32 %v1498_v19, %v762_v37  ;;  %v757_v41 = vadd.f32 %v756_v39, %v430_v30  ;;  %v1088_v42 = vpop.f32.mrf.mxu0 }
 0x100   :  { %v1151_v43 = vpop.f32.mrf.mxu1 }
 0x101   :  { %876 = vst.msk [vmem:[%s1664_s5 + $0xa8] sm:$0xff] %vm854_vm4, %v843_v40  ;;  %v842_v44 = vadd.f32 %v1498_v19, %v757_v41  ;;  %v772_v45 = vadd.f32 %v1151_v43, %v1085_v34  ;;  %v450_v46 = vpop.f32.mrf.mxu0 }
 0x102   :  { %v766_v47 = vpop.f32.mrf.mxu1 }
 0x103   :  { %875 = vst.msk [vmem:[%s1664_s5 + $0xa0] sm:$0xff] %vm854_vm4, %v842_v44  ;;  %v845_v48 = vadd.f32 %v1498_v19, %v772_v45  ;;  %v767_v49 = vadd.f32 %v766_v47, %v440_v38  ;;  %v1091_v50 = vpop.f32.mrf.mxu0 }
 0x104   :  { %v1154_v51 = vpop.f32.mrf.mxu1 }
 0x105   :  { %878 = vst.msk [vmem:[%s1664_s5 + $0xb8] sm:$0xff] %vm854_vm4, %v845_v48  ;;  %v844_v52 = vadd.f32 %v1498_v19, %v767_v49  ;;  %v782_v53 = vadd.f32 %v1154_v51, %v1088_v42  ;;  %v460_v54 = vpop.f32.mrf.mxu0 }
 0x106   :  { %v776_v55 = vpop.f32.mrf.mxu1 }
 0x107   :  { %877 = vst.msk [vmem:[%s1664_s5 + $0xb0] sm:$0xff] %vm854_vm4, %v844_v52  ;;  %v847_v56 = vadd.f32 %v1498_v19, %v782_v53  ;;  %v777_v57 = vadd.f32 %v776_v55, %v450_v46  ;;  %v1094_v58 = vpop.f32.mrf.mxu0 }
 0x108   :  { %v1157_v59 = vpop.f32.mrf.mxu1 }
 0x109   :  { %880 = vst.msk [vmem:[%s1664_s5 + $0xc8] sm:$0xff] %vm854_vm4, %v847_v56  ;;  %v846_v60 = vadd.f32 %v1498_v19, %v777_v57  ;;  %v792_v61 = vadd.f32 %v1157_v59, %v1091_v50  ;;  %v470_v63 = vpop.f32.mrf.mxu0 }
 0x10a   :  { %v786_v62 = vpop.f32.mrf.mxu1 }
 0x10b   :  { %879 = vst.msk [vmem:[%s1664_s5 + $0xc0] sm:$0xff] %vm854_vm4, %v846_v60  ;;  %v849_v0 = vadd.f32 %v1498_v19, %v792_v61  ;;  %v787_v1 = vadd.f32 %v786_v62, %v460_v54  ;;  %v1097_v5 = vpop.f32.mrf.mxu0 }
 0x10c   :  { %v1160_v2 = vpop.f32.mrf.mxu1 }
 0x10d   :  { %882 = vst.msk [vmem:[%s1664_s5 + $0xd8] sm:$0xff] %vm854_vm4, %v849_v0  ;;  %v848_v3 = vadd.f32 %v1498_v19, %v787_v1  ;;  %v802_v4 = vadd.f32 %v1160_v2, %v1094_v58  ;;  %v480_v12 = vpop.f32.mrf.mxu0 }
 0x10e   :  { %v796_v6 = vpop.f32.mrf.mxu1 }
 0x10f   :  { %881 = vst.msk [vmem:[%s1664_s5 + $0xd0] sm:$0xff] %vm854_vm4, %v848_v3  ;;  %v851_v7 = vadd.f32 %v1498_v19, %v802_v4  ;;  %v797_v8 = vadd.f32 %v796_v6, %v470_v63 }
 0x110   :  { %v1163_v9 = vpop.f32.mrf.mxu1 }
 0x111   :  { %884 = vst.msk [vmem:[%s1664_s5 + $0xe8] sm:$0xff] %vm854_vm4, %v851_v7  ;;  %v850_v10 = vadd.f32 %v1498_v19, %v797_v8  ;;  %v812_v11 = vadd.f32 %v1163_v9, %v1097_v5 }
 0x112   :  { %v806_v13 = vpop.f32.mrf.mxu1 }
 0x113   :  { %883 = vst.msk [vmem:[%s1664_s5 + $0xe0] sm:$0xff] %vm854_vm4, %v850_v10  ;;  %v853_v14 = vadd.f32 %v1498_v19, %v812_v11  ;;  %v807_v15 = vadd.f32 %v806_v13, %v480_v12 }
 0x115   :  { %887 = vst.msk [vmem:[%s1664_s5 + $0xf8] sm:$0x3] %vm886_vm5, %v853_v14  ;;  %v852_v16 = vadd.f32 %v1498_v19, %v807_v15 }
 0x117   :  { %885 = vst.msk [vmem:[%s1664_s5 + $0xf0] sm:$0xff] %vm854_vm4, %v852_v16 }

</bundles_post_ra>
